<compile_context>
chip_gen: v7x
topology: tpu7x:2x2x1
jax: 0.10.0
libtpu: 0.0.40
codegen_flags: <defaults>
</compile_context>

<pallas_src>
import math

import jax
import jax.numpy as jnp
from jax.experimental import pallas as pl
from jax.experimental.pallas import tpu as pltpu  # noqa: F401  (TPU backend assumed)

# ---- model hyper-parameters (small, deterministic, synthetic) ----
B, S, D, H, F = 2, 8, 32, 4, 64          # batch, seq, d_model, heads, d_ff
DH = D // H                               # per-head dim
N_LAYERS = 2
EPS = 1e-6                                # mc.LayerNormalization eps

# rows of the packed per-layer vector slab (each row padded to 128 lanes)
ROW_LN1A, ROW_LN1B, ROW_BQKV, ROW_BO, ROW_LN2A, ROW_LN2B, ROW_B1, ROW_B2 = range(8)
VEC_ROWS, VEC_LANES = 8, 128


def _layer_norm(h, a, b):
    # mc.LayerNormalization: alpha * (x - mean) / (std + eps) + bias
    # torch .std() is unbiased (divides by D-1) and eps is added to std (not var).
    mu = jnp.mean(h, axis=-1, keepdims=True)
    var = jnp.sum((h - mu) ** 2, axis=-1, keepdims=True) * (1.0 / (h.shape[-1] - 1))
    inv = pl.reciprocal(jnp.sqrt(var) + EPS, approx=True)   # EUP vrcp (approx=True only)
    return a * (h - mu) * inv + b


def fused_encoder_kernel(x_ref, maskz_ref,
                         wqkv_ref, wo_ref, w1_ref, w2_ref, vec_ref,
                         o_ref):
    x = x_ref[...]              # (B*S, D) residual stream, already flattened by the wrapper
    maskz = maskz_ref[...]      # (H*B, S, S) additive mask bias, pre-broadcast in the wrapper

    # Static unroll over layers: no grid-step overhead, cross-layer scheduling visibility.
    for layer in range(N_LAYERS):
        vec = vec_ref[layer]                                # (8, 128) packed vectors
        ln1a = vec[ROW_LN1A:ROW_LN1A + 1, :D]
        ln1b = vec[ROW_LN1B:ROW_LN1B + 1, :D]
        b_qkv = vec[ROW_BQKV:ROW_BQKV + 1, :3 * D]
        b_o = vec[ROW_BO:ROW_BO + 1, :D]
        ln2a = vec[ROW_LN2A:ROW_LN2A + 1, :D]
        ln2b = vec[ROW_LN2B:ROW_LN2B + 1, :D]
        b1 = vec[ROW_B1:ROW_B1 + 1, :F]
        b2 = vec[ROW_B2:ROW_B2 + 1, :D]

        # ---------------- self-attention sub-layer (pre-norm residual) ----------------
        h = _layer_norm(x, ln1a, ln1b)                      # (B*S, D)
        # Single QKV matmul; 1/sqrt(DH) already folded into the Wq / b_q columns offline.
        qkv = jnp.dot(h, wqkv_ref[layer],
                      preferred_element_type=jnp.float32) + b_qkv
        q, k, v = qkv[:, :D], qkv[:, D:2 * D], qkv[:, 2 * D:]

        # Fold all heads into ONE leading batch axis (z = head*B + batch) using only
        # lane slices + leading-axis concat/reshape (no 4-D transpose, no 2-batch-dim
        # dot_general), so every attention op below runs once for all heads.
        def split_heads(t):
            return jnp.concatenate(
                [t[:, hd * DH:(hd + 1) * DH] for hd in range(H)], axis=0
            ).reshape(H * B, S, DH)

        qz, kz, vz = split_heads(q), split_heads(k), split_heads(v)
        s = jnp.einsum("zqd,zkd->zqk", qz, kz,
                       preferred_element_type=jnp.float32)  # (H*B, S, S)
        s = s + maskz                                       # masked_fill(mask==0, -1e9)
        s = s - jnp.max(s, axis=-1, keepdims=True)          # one stabilizing max, all heads
        p = jnp.exp(s)
        p = p * pl.reciprocal(jnp.sum(p, axis=-1, keepdims=True), approx=True)  # EUP
        az = jnp.einsum("zqk,zkd->zqd", p, vz,
                        preferred_element_type=jnp.float32)  # (H*B, S, DH)
        # reassemble heads along lanes -> (B*S, D), then ONE output projection
        attn = jnp.concatenate(
            [az[hd * B:(hd + 1) * B].reshape(B * S, DH) for hd in range(H)], axis=-1)
        x = x + jnp.dot(attn, wo_ref[layer],
                        preferred_element_type=jnp.float32) + b_o

        # ---------------- feed-forward sub-layer (pre-norm residual) ----------------
        h2 = _layer_norm(x, ln2a, ln2b)
        f = jnp.dot(h2, w1_ref[layer], preferred_element_type=jnp.float32) + b1
        f = jnp.maximum(f, 0.0)
        x = x + jnp.dot(f, w2_ref[layer], preferred_element_type=jnp.float32) + b2

    o_ref[...] = x.astype(o_ref.dtype)


@jax.jit
def encoder_forward(x, mask_bias_z, packed):
    """Run all N_LAYERS encoder blocks in a single (grid-less) fused Pallas kernel."""
    wqkv, wo, w1, w2, vec = packed
    out = pl.pallas_call(
        fused_encoder_kernel,
        out_shape=jax.ShapeDtypeStruct((B * S, D), x.dtype),
        # no grid: whole arrays land in VMEM (total ~80 KB, fits every generation)
    )(x.reshape(B * S, D), mask_bias_z, wqkv, wo, w1, w2, vec)
    return out.reshape(B, S, D)


# ---------------- parameter packing (done once, outside the hot path) ----------------
def pack_params(all_params):
    scale = 1.0 / math.sqrt(DH)   # folded into Wq / b_q here, not in the kernel

    def pad_row(v):
        v = jnp.asarray(v, jnp.float32).reshape(-1)
        return jnp.pad(v, (0, VEC_LANES - v.shape[0]))

    wqkv_l, wo_l, w1_l, w2_l, vec_l = [], [], [], [], []
    for p in all_params:
        (ln1a, ln1b, wq, bq, wk, bk, wv, bv, wo, bo,
         ln2a, ln2b, w1, b1, w2, b2) = p
        wqkv_l.append(jnp.concatenate([wq * scale, wk, wv], axis=1))
        wo_l.append(wo)
        w1_l.append(w1)
        w2_l.append(w2)
        vec_l.append(jnp.stack([
            pad_row(ln1a), pad_row(ln1b),
            pad_row(jnp.concatenate([bq.reshape(-1) * scale,
                                     bk.reshape(-1), bv.reshape(-1)])),
            pad_row(bo),
            pad_row(ln2a), pad_row(ln2b),
            pad_row(b1), pad_row(b2),
        ]))
    # TODO(synk): optionally cast the weight slabs to bf16 (MXU win, esp. v5e) after
    # re-validating against the 1e-4 tolerance; kept f32 here to stay inside it.
    return (jnp.stack(wqkv_l), jnp.stack(wo_l), jnp.stack(w1_l),
            jnp.stack(w2_l), jnp.stack(vec_l))


# ---------------- pure-JAX reference (for correctness check) ----------------
def ref_block(x, mask, p):
    (ln1a, ln1b, wq, bq, wk, bk, wv, bv, wo, bo, ln2a, ln2b, w1, b1, w2, b2) = p

    def ln(h, a, b):
        mu = h.mean(-1, keepdims=True)
        var = ((h - mu) ** 2).sum(-1, keepdims=True) / (h.shape[-1] - 1)
        return a * (h - mu) / (jnp.sqrt(var) + EPS) + b

    h = ln(x, ln1a, ln1b)
    q = h @ wq + bq
    k = h @ wk + bk
    v = h @ wv + bv
    qh = q.reshape(B, S, H, DH).transpose(0, 2, 1, 3)
    kh = k.reshape(B, S, H, DH).transpose(0, 2, 1, 3)
    vh = v.reshape(B, S, H, DH).transpose(0, 2, 1, 3)
    s = jnp.einsum("bhqd,bhkd->bhqk", qh, kh) / math.sqrt(DH)
    s = jnp.where(mask[:, None, :, :] > 0, s, -1e9)
    p_ = jax.nn.softmax(s, axis=-1)
    o = jnp.einsum("bhqk,bhkd->bhqd", p_, vh).transpose(0, 2, 1, 3).reshape(B, S, D)
    x = x + o @ wo + bo
    h2 = ln(x, ln2a, ln2b)
    f = jnp.maximum(h2 @ w1 + b1, 0.0) @ w2 + b2
    return x + f


def ref_forward(x, mask, all_params):
    for p in all_params:
        x = ref_block(x, mask, p)
    return x


def init_layer_params(key):
    ks = jax.random.split(key, 6)
    std = 0.02
    ln1a = jnp.ones((1, D), jnp.float32)
    ln1b = jnp.zeros((1, D), jnp.float32)
    wq = std * jax.random.normal(ks[0], (D, D), jnp.float32)
    wk = std * jax.random.normal(ks[1], (D, D), jnp.float32)
    wv = std * jax.random.normal(ks[2], (D, D), jnp.float32)
    wo = std * jax.random.normal(ks[3], (D, D), jnp.float32)
    bq = jnp.zeros((1, D), jnp.float32)
    bk = jnp.zeros((1, D), jnp.float32)
    bv = jnp.zeros((1, D), jnp.float32)
    bo = jnp.zeros((1, D), jnp.float32)
    ln2a = jnp.ones((1, D), jnp.float32)
    ln2b = jnp.zeros((1, D), jnp.float32)
    w1 = std * jax.random.normal(ks[4], (D, F), jnp.float32)
    b1 = jnp.zeros((1, F), jnp.float32)
    w2 = std * jax.random.normal(ks[5], (F, D), jnp.float32)
    b2 = jnp.zeros((1, D), jnp.float32)
    return (ln1a, ln1b, wq, bq, wk, bk, wv, bv, wo, bo,
            ln2a, ln2b, w1, b1, w2, b2)


if __name__ == "__main__":
    key = jax.random.PRNGKey(0)
    kx, kp = jax.random.split(key)

    x = jax.random.normal(kx, (B, S, D), jnp.float32)
    # src_mask: 1.0 = attendable key; mask out the last two key positions of batch 1
    mask = jnp.ones((B, 1, S), jnp.float32)
    mask = mask.at[1, 0, S - 2:].set(0.0)
    # additive mask bias, pre-broadcast ONCE to the exact (H*B, S, S) score shape
    # the kernel uses (z = head*B + batch); reused by every layer.
    mask_bias = jnp.where(mask > 0.0, 0.0, -1e9).astype(jnp.float32)     # (B, 1, S)
    mask_bias_z = jnp.broadcast_to(mask_bias[None, :, :, :],
                                   (H, B, S, S)).reshape(H * B, S, S)

    layer_keys = jax.random.split(kp, N_LAYERS)
    all_params = [init_layer_params(k) for k in layer_keys]
    packed = pack_params(all_params)

    out = encoder_forward(x, mask_bias_z, packed)
    out = jax.block_until_ready(out)

    ref = ref_forward(x, mask, all_params)
    assert out.shape == (B, S, D)
    assert jnp.allclose(out, ref, atol=1e-4, rtol=1e-4), "mismatch vs. pure-JAX reference"

    print("KERNEL_OK")
</pallas_src>

<mosaic_0001>
module attributes {stable_mosaic.version = 11 : i64} {
  func.func @fused_encoder_kernel(%arg0: memref<16x32xf32, #tpu.memory_space<vmem>>, %arg1: memref<8x8x8xf32, #tpu.memory_space<vmem>>, %arg2: memref<2x32x96xf32, #tpu.memory_space<vmem>>, %arg3: memref<2x32x32xf32, #tpu.memory_space<vmem>>, %arg4: memref<2x32x64xf32, #tpu.memory_space<vmem>>, %arg5: memref<2x64x32xf32, #tpu.memory_space<vmem>>, %arg6: memref<2x8x128xf32, #tpu.memory_space<vmem>>, %arg7: memref<16x32xf32, #tpu.memory_space<vmem>>) attributes {dimension_semantics = [], scalar_prefetch = 0 : i64, scratch_operands = 0 : i64, tpu.core_type = #tpu.core_type<tc>} {
    %c0 = arith.constant 0 : index
    %c0_0 = arith.constant 0 : index
    %0 = vector.load %arg0[%c0, %c0_0] : memref<16x32xf32, #tpu.memory_space<vmem>>, vector<16x32xf32>
    %c0_1 = arith.constant 0 : index
    %c0_2 = arith.constant 0 : index
    %c0_3 = arith.constant 0 : index
    %1 = vector.load %arg1[%c0_1, %c0_2, %c0_3] : memref<8x8x8xf32, #tpu.memory_space<vmem>>, vector<8x8x8xf32>
    %c0_4 = arith.constant 0 : index
    %c0_5 = arith.constant 0 : index
    %c0_6 = arith.constant 0 : index
    %2 = vector.load %arg6[%c0_4, %c0_5, %c0_6] : memref<2x8x128xf32, #tpu.memory_space<vmem>>, vector<1x8x128xf32>
    %3 = vector.shape_cast %2 : vector<1x8x128xf32> to vector<8x128xf32>
    %4 = vector.extract_strided_slice %3 {offsets = [0, 0], sizes = [1, 32], strides = [1, 1]} : vector<8x128xf32> to vector<1x32xf32>
    %5 = vector.extract_strided_slice %3 {offsets = [1, 0], sizes = [1, 32], strides = [1, 1]} : vector<8x128xf32> to vector<1x32xf32>
    %6 = vector.extract_strided_slice %3 {offsets = [2, 0], sizes = [1, 96], strides = [1, 1]} : vector<8x128xf32> to vector<1x96xf32>
    %7 = vector.extract_strided_slice %3 {offsets = [3, 0], sizes = [1, 32], strides = [1, 1]} : vector<8x128xf32> to vector<1x32xf32>
    %8 = vector.extract_strided_slice %3 {offsets = [4, 0], sizes = [1, 32], strides = [1, 1]} : vector<8x128xf32> to vector<1x32xf32>
    %9 = vector.extract_strided_slice %3 {offsets = [5, 0], sizes = [1, 32], strides = [1, 1]} : vector<8x128xf32> to vector<1x32xf32>
    %10 = vector.extract_strided_slice %3 {offsets = [6, 0], sizes = [1, 64], strides = [1, 1]} : vector<8x128xf32> to vector<1x64xf32>
    %11 = vector.extract_strided_slice %3 {offsets = [7, 0], sizes = [1, 32], strides = [1, 1]} : vector<8x128xf32> to vector<1x32xf32>
    %cst = arith.constant dense<0.000000e+00> : vector<16xf32>
    %12 = vector.multi_reduction <add>, %0, %cst [1] : vector<16x32xf32> to vector<16xf32>
    %13 = vector.shape_cast %12 : vector<16xf32> to vector<16x1xf32>
    %cst_7 = arith.constant 3.200000e+01 : f32
    %14 = vector.broadcast %cst_7 : f32 to vector<16x1xf32>
    %15 = arith.divf %13, %14 : vector<16x1xf32>
    %16 = vector.broadcast %15 : vector<16x1xf32> to vector<16x32xf32>
    %17 = arith.subf %0, %16 : vector<16x32xf32>
    %18 = arith.mulf %17, %17 : vector<16x32xf32>
    %cst_8 = arith.constant dense<0.000000e+00> : vector<16xf32>
    %19 = vector.multi_reduction <add>, %18, %cst_8 [1] : vector<16x32xf32> to vector<16xf32>
    %20 = vector.shape_cast %19 : vector<16xf32> to vector<16x1xf32>
    %cst_9 = arith.constant 0.0322580636 : f32
    %21 = vector.broadcast %cst_9 : f32 to vector<16x1xf32>
    %22 = arith.mulf %20, %21 : vector<16x1xf32>
    %23 = math.sqrt %22 : vector<16x1xf32>
    %cst_10 = arith.constant 9.99999997E-7 : f32
    %24 = vector.broadcast %cst_10 : f32 to vector<16x1xf32>
    %25 = arith.addf %23, %24 : vector<16x1xf32>
    %26 = tpu.reciprocal %25 {approx = true} : vector<16x1xf32> -> vector<16x1xf32>
    %27 = vector.broadcast %15 : vector<16x1xf32> to vector<16x32xf32>
    %28 = arith.subf %0, %27 : vector<16x32xf32>
    %29 = vector.broadcast %4 : vector<1x32xf32> to vector<16x32xf32>
    %30 = arith.mulf %29, %28 : vector<16x32xf32>
    %31 = vector.broadcast %26 : vector<16x1xf32> to vector<16x32xf32>
    %32 = arith.mulf %30, %31 : vector<16x32xf32>
    %33 = vector.broadcast %5 : vector<1x32xf32> to vector<16x32xf32>
    %34 = arith.addf %32, %33 : vector<16x32xf32>
    %c0_11 = arith.constant 0 : index
    %c0_12 = arith.constant 0 : index
    %c0_13 = arith.constant 0 : index
    %35 = vector.load %arg2[%c0_11, %c0_12, %c0_13] : memref<2x32x96xf32, #tpu.memory_space<vmem>>, vector<1x32x96xf32>
    %36 = vector.shape_cast %35 : vector<1x32x96xf32> to vector<32x96xf32>
    %cst_14 = arith.constant dense<0.000000e+00> : vector<16x96xf32>
    %37 = tpu.matmul %34, %36, %cst_14 {dimension_numbers = #tpu.dot_dimension_numbers<[1], [0], [0], [1], [0, 0, 1, 1], [], []>} : vector<16x32xf32>, vector<32x96xf32>, vector<16x96xf32> -> vector<16x96xf32>
    %38 = vector.broadcast %6 : vector<1x96xf32> to vector<16x96xf32>
    %39 = arith.addf %37, %38 : vector<16x96xf32>
    %40 = vector.extract_strided_slice %39 {offsets = [0, 0], sizes = [16, 32], strides = [1, 1]} : vector<16x96xf32> to vector<16x32xf32>
    %41 = vector.extract_strided_slice %39 {offsets = [0, 32], sizes = [16, 32], strides = [1, 1]} : vector<16x96xf32> to vector<16x32xf32>
    %42 = vector.extract_strided_slice %39 {offsets = [0, 64], sizes = [16, 32], strides = [1, 1]} : vector<16x96xf32> to vector<16x32xf32>
    %43 = vector.extract_strided_slice %40 {offsets = [0, 0], sizes = [16, 8], strides = [1, 1]} : vector<16x32xf32> to vector<16x8xf32>
    %44 = vector.extract_strided_slice %40 {offsets = [0, 8], sizes = [16, 8], strides = [1, 1]} : vector<16x32xf32> to vector<16x8xf32>
    %45 = vector.extract_strided_slice %40 {offsets = [0, 16], sizes = [16, 8], strides = [1, 1]} : vector<16x32xf32> to vector<16x8xf32>
    %46 = vector.extract_strided_slice %40 {offsets = [0, 24], sizes = [16, 8], strides = [1, 1]} : vector<16x32xf32> to vector<16x8xf32>
    %47 = tpu.concatenate %43, %44, %45, %46 in 0 : vector<16x8xf32>, vector<16x8xf32>, vector<16x8xf32>, vector<16x8xf32> -> vector<64x8xf32>
    %48 = vector.shape_cast %47 : vector<64x8xf32> to vector<8x8x8xf32>
    %49 = vector.extract_strided_slice %41 {offsets = [0, 0], sizes = [16, 8], strides = [1, 1]} : vector<16x32xf32> to vector<16x8xf32>
    %50 = vector.extract_strided_slice %41 {offsets = [0, 8], sizes = [16, 8], strides = [1, 1]} : vector<16x32xf32> to vector<16x8xf32>
    %51 = vector.extract_strided_slice %41 {offsets = [0, 16], sizes = [16, 8], strides = [1, 1]} : vector<16x32xf32> to vector<16x8xf32>
    %52 = vector.extract_strided_slice %41 {offsets = [0, 24], sizes = [16, 8], strides = [1, 1]} : vector<16x32xf32> to vector<16x8xf32>
    %53 = tpu.concatenate %49, %50, %51, %52 in 0 : vector<16x8xf32>, vector<16x8xf32>, vector<16x8xf32>, vector<16x8xf32> -> vector<64x8xf32>
    %54 = vector.shape_cast %53 : vector<64x8xf32> to vector<8x8x8xf32>
    %55 = vector.extract_strided_slice %42 {offsets = [0, 0], sizes = [16, 8], strides = [1, 1]} : vector<16x32xf32> to vector<16x8xf32>
    %56 = vector.extract_strided_slice %42 {offsets = [0, 8], sizes = [16, 8], strides = [1, 1]} : vector<16x32xf32> to vector<16x8xf32>
    %57 = vector.extract_strided_slice %42 {offsets = [0, 16], sizes = [16, 8], strides = [1, 1]} : vector<16x32xf32> to vector<16x8xf32>
    %58 = vector.extract_strided_slice %42 {offsets = [0, 24], sizes = [16, 8], strides = [1, 1]} : vector<16x32xf32> to vector<16x8xf32>
    %59 = tpu.concatenate %55, %56, %57, %58 in 0 : vector<16x8xf32>, vector<16x8xf32>, vector<16x8xf32>, vector<16x8xf32> -> vector<64x8xf32>
    %60 = vector.shape_cast %59 : vector<64x8xf32> to vector<8x8x8xf32>
    "tpu.trace_start"() <{level = 10 : i32, message = "zqd,zkd->zqk"}> : () -> ()
    %cst_15 = arith.constant dense<0.000000e+00> : vector<8x8x8xf32>
    %61 = tpu.matmul %48, %54, %cst_15 {dimension_numbers = #tpu.dot_dimension_numbers<[2], [2], [1], [1], [0, 0, 0, 1, 1, 1], [0], [0]>} : vector<8x8x8xf32>, vector<8x8x8xf32>, vector<8x8x8xf32> -> vector<8x8x8xf32>
    "tpu.trace_stop"() : () -> ()
    %62 = arith.addf %61, %1 : vector<8x8x8xf32>
    %cst_16 = arith.constant dense<0xFF800000> : vector<8x8xf32>
    %63 = vector.multi_reduction <maximumf>, %62, %cst_16 [2] : vector<8x8x8xf32> to vector<8x8xf32>
    %64 = vector.shape_cast %63 : vector<8x8xf32> to vector<8x8x1xf32>
    %65 = vector.broadcast %64 : vector<8x8x1xf32> to vector<8x8x8xf32>
    %66 = arith.subf %62, %65 : vector<8x8x8xf32>
    %67 = math.exp %66 : vector<8x8x8xf32>
    %cst_17 = arith.constant dense<0.000000e+00> : vector<8x8xf32>
    %68 = vector.multi_reduction <add>, %67, %cst_17 [2] : vector<8x8x8xf32> to vector<8x8xf32>
    %69 = vector.shape_cast %68 : vector<8x8xf32> to vector<8x8x1xf32>
    %70 = tpu.reciprocal %69 {approx = true} : vector<8x8x1xf32> -> vector<8x8x1xf32>
    %71 = vector.broadcast %70 : vector<8x8x1xf32> to vector<8x8x8xf32>
    %72 = arith.mulf %67, %71 : vector<8x8x8xf32>
    "tpu.trace_start"() <{level = 10 : i32, message = "zqk,zkd->zqd"}> : () -> ()
    %cst_18 = arith.constant dense<0.000000e+00> : vector<8x8x8xf32>
    %73 = tpu.matmul %72, %60, %cst_18 {dimension_numbers = #tpu.dot_dimension_numbers<[2], [1], [1], [2], [0, 0, 0, 1, 1, 2], [0], [0]>} : vector<8x8x8xf32>, vector<8x8x8xf32>, vector<8x8x8xf32> -> vector<8x8x8xf32>
    "tpu.trace_stop"() : () -> ()
    %74 = vector.extract_strided_slice %73 {offsets = [0, 0, 0], sizes = [2, 8, 8], strides = [1, 1, 1]} : vector<8x8x8xf32> to vector<2x8x8xf32>
    %75 = vector.shape_cast %74 : vector<2x8x8xf32> to vector<16x8xf32>
    %76 = vector.extract_strided_slice %73 {offsets = [2, 0, 0], sizes = [2, 8, 8], strides = [1, 1, 1]} : vector<8x8x8xf32> to vector<2x8x8xf32>
    %77 = vector.shape_cast %76 : vector<2x8x8xf32> to vector<16x8xf32>
    %78 = vector.extract_strided_slice %73 {offsets = [4, 0, 0], sizes = [2, 8, 8], strides = [1, 1, 1]} : vector<8x8x8xf32> to vector<2x8x8xf32>
    %79 = vector.shape_cast %78 : vector<2x8x8xf32> to vector<16x8xf32>
    %80 = vector.extract_strided_slice %73 {offsets = [6, 0, 0], sizes = [2, 8, 8], strides = [1, 1, 1]} : vector<8x8x8xf32> to vector<2x8x8xf32>
    %81 = vector.shape_cast %80 : vector<2x8x8xf32> to vector<16x8xf32>
    %82 = tpu.concatenate %75, %77, %79, %81 in 1 : vector<16x8xf32>, vector<16x8xf32>, vector<16x8xf32>, vector<16x8xf32> -> vector<16x32xf32>
    %c0_19 = arith.constant 0 : index
    %c0_20 = arith.constant 0 : index
    %c0_21 = arith.constant 0 : index
    %83 = vector.load %arg3[%c0_19, %c0_20, %c0_21] : memref<2x32x32xf32, #tpu.memory_space<vmem>>, vector<1x32x32xf32>
    %84 = vector.shape_cast %83 : vector<1x32x32xf32> to vector<32x32xf32>
    %cst_22 = arith.constant dense<0.000000e+00> : vector<16x32xf32>
    %85 = tpu.matmul %82, %84, %cst_22 {dimension_numbers = #tpu.dot_dimension_numbers<[1], [0], [0], [1], [0, 0, 1, 1], [], []>} : vector<16x32xf32>, vector<32x32xf32>, vector<16x32xf32> -> vector<16x32xf32>
    %86 = arith.addf %0, %85 : vector<16x32xf32>
    %87 = vector.broadcast %7 : vector<1x32xf32> to vector<16x32xf32>
    %88 = arith.addf %86, %87 : vector<16x32xf32>
    %cst_23 = arith.constant dense<0.000000e+00> : vector<16xf32>
    %89 = vector.multi_reduction <add>, %88, %cst_23 [1] : vector<16x32xf32> to vector<16xf32>
    %90 = vector.shape_cast %89 : vector<16xf32> to vector<16x1xf32>
    %cst_24 = arith.constant 3.200000e+01 : f32
    %91 = vector.broadcast %cst_24 : f32 to vector<16x1xf32>
    %92 = arith.divf %90, %91 : vector<16x1xf32>
    %93 = vector.broadcast %92 : vector<16x1xf32> to vector<16x32xf32>
    %94 = arith.subf %88, %93 : vector<16x32xf32>
    %95 = arith.mulf %94, %94 : vector<16x32xf32>
    %cst_25 = arith.constant dense<0.000000e+00> : vector<16xf32>
    %96 = vector.multi_reduction <add>, %95, %cst_25 [1] : vector<16x32xf32> to vector<16xf32>
    %97 = vector.shape_cast %96 : vector<16xf32> to vector<16x1xf32>
    %cst_26 = arith.constant 0.0322580636 : f32
    %98 = vector.broadcast %cst_26 : f32 to vector<16x1xf32>
    %99 = arith.mulf %97, %98 : vector<16x1xf32>
    %100 = math.sqrt %99 : vector<16x1xf32>
    %cst_27 = arith.constant 9.99999997E-7 : f32
    %101 = vector.broadcast %cst_27 : f32 to vector<16x1xf32>
    %102 = arith.addf %100, %101 : vector<16x1xf32>
    %103 = tpu.reciprocal %102 {approx = true} : vector<16x1xf32> -> vector<16x1xf32>
    %104 = vector.broadcast %92 : vector<16x1xf32> to vector<16x32xf32>
    %105 = arith.subf %88, %104 : vector<16x32xf32>
    %106 = vector.broadcast %8 : vector<1x32xf32> to vector<16x32xf32>
    %107 = arith.mulf %106, %105 : vector<16x32xf32>
    %108 = vector.broadcast %103 : vector<16x1xf32> to vector<16x32xf32>
    %109 = arith.mulf %107, %108 : vector<16x32xf32>
    %110 = vector.broadcast %9 : vector<1x32xf32> to vector<16x32xf32>
    %111 = arith.addf %109, %110 : vector<16x32xf32>
    %c0_28 = arith.constant 0 : index
    %c0_29 = arith.constant 0 : index
    %c0_30 = arith.constant 0 : index
    %112 = vector.load %arg4[%c0_28, %c0_29, %c0_30] : memref<2x32x64xf32, #tpu.memory_space<vmem>>, vector<1x32x64xf32>
    %113 = vector.shape_cast %112 : vector<1x32x64xf32> to vector<32x64xf32>
    %cst_31 = arith.constant dense<0.000000e+00> : vector<16x64xf32>
    %114 = tpu.matmul %111, %113, %cst_31 {dimension_numbers = #tpu.dot_dimension_numbers<[1], [0], [0], [1], [0, 0, 1, 1], [], []>} : vector<16x32xf32>, vector<32x64xf32>, vector<16x64xf32> -> vector<16x64xf32>
    %115 = vector.broadcast %10 : vector<1x64xf32> to vector<16x64xf32>
    %116 = arith.addf %114, %115 : vector<16x64xf32>
    %cst_32 = arith.constant 0.000000e+00 : f32
    %117 = vector.broadcast %cst_32 : f32 to vector<16x64xf32>
    %118 = arith.maximumf %116, %117 : vector<16x64xf32>
    %c0_33 = arith.constant 0 : index
    %c0_34 = arith.constant 0 : index
    %c0_35 = arith.constant 0 : index
    %119 = vector.load %arg5[%c0_33, %c0_34, %c0_35] : memref<2x64x32xf32, #tpu.memory_space<vmem>>, vector<1x64x32xf32>
    %120 = vector.shape_cast %119 : vector<1x64x32xf32> to vector<64x32xf32>
    %cst_36 = arith.constant dense<0.000000e+00> : vector<16x32xf32>
    %121 = tpu.matmul %118, %120, %cst_36 {dimension_numbers = #tpu.dot_dimension_numbers<[1], [0], [0], [1], [0, 0, 1, 1], [], []>} : vector<16x64xf32>, vector<64x32xf32>, vector<16x32xf32> -> vector<16x32xf32>
    %122 = arith.addf %88, %121 : vector<16x32xf32>
    %123 = vector.broadcast %11 : vector<1x32xf32> to vector<16x32xf32>
    %124 = arith.addf %122, %123 : vector<16x32xf32>
    %c1 = arith.constant 1 : index
    %c0_37 = arith.constant 0 : index
    %c0_38 = arith.constant 0 : index
    %125 = vector.load %arg6[%c1, %c0_37, %c0_38] : memref<2x8x128xf32, #tpu.memory_space<vmem>>, vector<1x8x128xf32>
    %126 = vector.shape_cast %125 : vector<1x8x128xf32> to vector<8x128xf32>
    %127 = vector.extract_strided_slice %126 {offsets = [0, 0], sizes = [1, 32], strides = [1, 1]} : vector<8x128xf32> to vector<1x32xf32>
    %128 = vector.extract_strided_slice %126 {offsets = [1, 0], sizes = [1, 32], strides = [1, 1]} : vector<8x128xf32> to vector<1x32xf32>
    %129 = vector.extract_strided_slice %126 {offsets = [2, 0], sizes = [1, 96], strides = [1, 1]} : vector<8x128xf32> to vector<1x96xf32>
    %130 = vector.extract_strided_slice %126 {offsets = [3, 0], sizes = [1, 32], strides = [1, 1]} : vector<8x128xf32> to vector<1x32xf32>
    %131 = vector.extract_strided_slice %126 {offsets = [4, 0], sizes = [1, 32], strides = [1, 1]} : vector<8x128xf32> to vector<1x32xf32>
    %132 = vector.extract_strided_slice %126 {offsets = [5, 0], sizes = [1, 32], strides = [1, 1]} : vector<8x128xf32> to vector<1x32xf32>
    %133 = vector.extract_strided_slice %126 {offsets = [6, 0], sizes = [1, 64], strides = [1, 1]} : vector<8x128xf32> to vector<1x64xf32>
    %134 = vector.extract_strided_slice %126 {offsets = [7, 0], sizes = [1, 32], strides = [1, 1]} : vector<8x128xf32> to vector<1x32xf32>
    %cst_39 = arith.constant dense<0.000000e+00> : vector<16xf32>
    %135 = vector.multi_reduction <add>, %124, %cst_39 [1] : vector<16x32xf32> to vector<16xf32>
    %136 = vector.shape_cast %135 : vector<16xf32> to vector<16x1xf32>
    %cst_40 = arith.constant 3.200000e+01 : f32
    %137 = vector.broadcast %cst_40 : f32 to vector<16x1xf32>
    %138 = arith.divf %136, %137 : vector<16x1xf32>
    %139 = vector.broadcast %138 : vector<16x1xf32> to vector<16x32xf32>
    %140 = arith.subf %124, %139 : vector<16x32xf32>
    %141 = arith.mulf %140, %140 : vector<16x32xf32>
    %cst_41 = arith.constant dense<0.000000e+00> : vector<16xf32>
    %142 = vector.multi_reduction <add>, %141, %cst_41 [1] : vector<16x32xf32> to vector<16xf32>
    %143 = vector.shape_cast %142 : vector<16xf32> to vector<16x1xf32>
    %cst_42 = arith.constant 0.0322580636 : f32
    %144 = vector.broadcast %cst_42 : f32 to vector<16x1xf32>
    %145 = arith.mulf %143, %144 : vector<16x1xf32>
    %146 = math.sqrt %145 : vector<16x1xf32>
    %cst_43 = arith.constant 9.99999997E-7 : f32
    %147 = vector.broadcast %cst_43 : f32 to vector<16x1xf32>
    %148 = arith.addf %146, %147 : vector<16x1xf32>
    %149 = tpu.reciprocal %148 {approx = true} : vector<16x1xf32> -> vector<16x1xf32>
    %150 = vector.broadcast %138 : vector<16x1xf32> to vector<16x32xf32>
    %151 = arith.subf %124, %150 : vector<16x32xf32>
    %152 = vector.broadcast %127 : vector<1x32xf32> to vector<16x32xf32>
    %153 = arith.mulf %152, %151 : vector<16x32xf32>
    %154 = vector.broadcast %149 : vector<16x1xf32> to vector<16x32xf32>
    %155 = arith.mulf %153, %154 : vector<16x32xf32>
    %156 = vector.broadcast %128 : vector<1x32xf32> to vector<16x32xf32>
    %157 = arith.addf %155, %156 : vector<16x32xf32>
    %c1_44 = arith.constant 1 : index
    %c0_45 = arith.constant 0 : index
    %c0_46 = arith.constant 0 : index
    %158 = vector.load %arg2[%c1_44, %c0_45, %c0_46] : memref<2x32x96xf32, #tpu.memory_space<vmem>>, vector<1x32x96xf32>
    %159 = vector.shape_cast %158 : vector<1x32x96xf32> to vector<32x96xf32>
    %cst_47 = arith.constant dense<0.000000e+00> : vector<16x96xf32>
    %160 = tpu.matmul %157, %159, %cst_47 {dimension_numbers = #tpu.dot_dimension_numbers<[1], [0], [0], [1], [0, 0, 1, 1], [], []>} : vector<16x32xf32>, vector<32x96xf32>, vector<16x96xf32> -> vector<16x96xf32>
    %161 = vector.broadcast %129 : vector<1x96xf32> to vector<16x96xf32>
    %162 = arith.addf %160, %161 : vector<16x96xf32>
    %163 = vector.extract_strided_slice %162 {offsets = [0, 0], sizes = [16, 32], strides = [1, 1]} : vector<16x96xf32> to vector<16x32xf32>
    %164 = vector.extract_strided_slice %162 {offsets = [0, 32], sizes = [16, 32], strides = [1, 1]} : vector<16x96xf32> to vector<16x32xf32>
    %165 = vector.extract_strided_slice %162 {offsets = [0, 64], sizes = [16, 32], strides = [1, 1]} : vector<16x96xf32> to vector<16x32xf32>
    %166 = vector.extract_strided_slice %163 {offsets = [0, 0], sizes = [16, 8], strides = [1, 1]} : vector<16x32xf32> to vector<16x8xf32>
    %167 = vector.extract_strided_slice %163 {offsets = [0, 8], sizes = [16, 8], strides = [1, 1]} : vector<16x32xf32> to vector<16x8xf32>
    %168 = vector.extract_strided_slice %163 {offsets = [0, 16], sizes = [16, 8], strides = [1, 1]} : vector<16x32xf32> to vector<16x8xf32>
    %169 = vector.extract_strided_slice %163 {offsets = [0, 24], sizes = [16, 8], strides = [1, 1]} : vector<16x32xf32> to vector<16x8xf32>
    %170 = tpu.concatenate %166, %167, %168, %169 in 0 : vector<16x8xf32>, vector<16x8xf32>, vector<16x8xf32>, vector<16x8xf32> -> vector<64x8xf32>
    %171 = vector.shape_cast %170 : vector<64x8xf32> to vector<8x8x8xf32>
    %172 = vector.extract_strided_slice %164 {offsets = [0, 0], sizes = [16, 8], strides = [1, 1]} : vector<16x32xf32> to vector<16x8xf32>
    %173 = vector.extract_strided_slice %164 {offsets = [0, 8], sizes = [16, 8], strides = [1, 1]} : vector<16x32xf32> to vector<16x8xf32>
    %174 = vector.extract_strided_slice %164 {offsets = [0, 16], sizes = [16, 8], strides = [1, 1]} : vector<16x32xf32> to vector<16x8xf32>
    %175 = vector.extract_strided_slice %164 {offsets = [0, 24], sizes = [16, 8], strides = [1, 1]} : vector<16x32xf32> to vector<16x8xf32>
    %176 = tpu.concatenate %172, %173, %174, %175 in 0 : vector<16x8xf32>, vector<16x8xf32>, vector<16x8xf32>, vector<16x8xf32> -> vector<64x8xf32>
    %177 = vector.shape_cast %176 : vector<64x8xf32> to vector<8x8x8xf32>
    %178 = vector.extract_strided_slice %165 {offsets = [0, 0], sizes = [16, 8], strides = [1, 1]} : vector<16x32xf32> to vector<16x8xf32>
    %179 = vector.extract_strided_slice %165 {offsets = [0, 8], sizes = [16, 8], strides = [1, 1]} : vector<16x32xf32> to vector<16x8xf32>
    %180 = vector.extract_strided_slice %165 {offsets = [0, 16], sizes = [16, 8], strides = [1, 1]} : vector<16x32xf32> to vector<16x8xf32>
    %181 = vector.extract_strided_slice %165 {offsets = [0, 24], sizes = [16, 8], strides = [1, 1]} : vector<16x32xf32> to vector<16x8xf32>
    %182 = tpu.concatenate %178, %179, %180, %181 in 0 : vector<16x8xf32>, vector<16x8xf32>, vector<16x8xf32>, vector<16x8xf32> -> vector<64x8xf32>
    %183 = vector.shape_cast %182 : vector<64x8xf32> to vector<8x8x8xf32>
    "tpu.trace_start"() <{level = 10 : i32, message = "zqd,zkd->zqk"}> : () -> ()
    %cst_48 = arith.constant dense<0.000000e+00> : vector<8x8x8xf32>
    %184 = tpu.matmul %171, %177, %cst_48 {dimension_numbers = #tpu.dot_dimension_numbers<[2], [2], [1], [1], [0, 0, 0, 1, 1, 1], [0], [0]>} : vector<8x8x8xf32>, vector<8x8x8xf32>, vector<8x8x8xf32> -> vector<8x8x8xf32>
    "tpu.trace_stop"() : () -> ()
    %185 = arith.addf %184, %1 : vector<8x8x8xf32>
    %cst_49 = arith.constant dense<0xFF800000> : vector<8x8xf32>
    %186 = vector.multi_reduction <maximumf>, %185, %cst_49 [2] : vector<8x8x8xf32> to vector<8x8xf32>
    %187 = vector.shape_cast %186 : vector<8x8xf32> to vector<8x8x1xf32>
    %188 = vector.broadcast %187 : vector<8x8x1xf32> to vector<8x8x8xf32>
    %189 = arith.subf %185, %188 : vector<8x8x8xf32>
    %190 = math.exp %189 : vector<8x8x8xf32>
    %cst_50 = arith.constant dense<0.000000e+00> : vector<8x8xf32>
    %191 = vector.multi_reduction <add>, %190, %cst_50 [2] : vector<8x8x8xf32> to vector<8x8xf32>
    %192 = vector.shape_cast %191 : vector<8x8xf32> to vector<8x8x1xf32>
    %193 = tpu.reciprocal %192 {approx = true} : vector<8x8x1xf32> -> vector<8x8x1xf32>
    %194 = vector.broadcast %193 : vector<8x8x1xf32> to vector<8x8x8xf32>
    %195 = arith.mulf %190, %194 : vector<8x8x8xf32>
    "tpu.trace_start"() <{level = 10 : i32, message = "zqk,zkd->zqd"}> : () -> ()
    %cst_51 = arith.constant dense<0.000000e+00> : vector<8x8x8xf32>
    %196 = tpu.matmul %195, %183, %cst_51 {dimension_numbers = #tpu.dot_dimension_numbers<[2], [1], [1], [2], [0, 0, 0, 1, 1, 2], [0], [0]>} : vector<8x8x8xf32>, vector<8x8x8xf32>, vector<8x8x8xf32> -> vector<8x8x8xf32>
    "tpu.trace_stop"() : () -> ()
    %197 = vector.extract_strided_slice %196 {offsets = [0, 0, 0], sizes = [2, 8, 8], strides = [1, 1, 1]} : vector<8x8x8xf32> to vector<2x8x8xf32>
    %198 = vector.shape_cast %197 : vector<2x8x8xf32> to vector<16x8xf32>
    %199 = vector.extract_strided_slice %196 {offsets = [2, 0, 0], sizes = [2, 8, 8], strides = [1, 1, 1]} : vector<8x8x8xf32> to vector<2x8x8xf32>
    %200 = vector.shape_cast %199 : vector<2x8x8xf32> to vector<16x8xf32>
    %201 = vector.extract_strided_slice %196 {offsets = [4, 0, 0], sizes = [2, 8, 8], strides = [1, 1, 1]} : vector<8x8x8xf32> to vector<2x8x8xf32>
    %202 = vector.shape_cast %201 : vector<2x8x8xf32> to vector<16x8xf32>
    %203 = vector.extract_strided_slice %196 {offsets = [6, 0, 0], sizes = [2, 8, 8], strides = [1, 1, 1]} : vector<8x8x8xf32> to vector<2x8x8xf32>
    %204 = vector.shape_cast %203 : vector<2x8x8xf32> to vector<16x8xf32>
    %205 = tpu.concatenate %198, %200, %202, %204 in 1 : vector<16x8xf32>, vector<16x8xf32>, vector<16x8xf32>, vector<16x8xf32> -> vector<16x32xf32>
    %c1_52 = arith.constant 1 : index
    %c0_53 = arith.constant 0 : index
    %c0_54 = arith.constant 0 : index
    %206 = vector.load %arg3[%c1_52, %c0_53, %c0_54] : memref<2x32x32xf32, #tpu.memory_space<vmem>>, vector<1x32x32xf32>
    %207 = vector.shape_cast %206 : vector<1x32x32xf32> to vector<32x32xf32>
    %cst_55 = arith.constant dense<0.000000e+00> : vector<16x32xf32>
    %208 = tpu.matmul %205, %207, %cst_55 {dimension_numbers = #tpu.dot_dimension_numbers<[1], [0], [0], [1], [0, 0, 1, 1], [], []>} : vector<16x32xf32>, vector<32x32xf32>, vector<16x32xf32> -> vector<16x32xf32>
    %209 = arith.addf %124, %208 : vector<16x32xf32>
    %210 = vector.broadcast %130 : vector<1x32xf32> to vector<16x32xf32>
    %211 = arith.addf %209, %210 : vector<16x32xf32>
    %cst_56 = arith.constant dense<0.000000e+00> : vector<16xf32>
    %212 = vector.multi_reduction <add>, %211, %cst_56 [1] : vector<16x32xf32> to vector<16xf32>
    %213 = vector.shape_cast %212 : vector<16xf32> to vector<16x1xf32>
    %cst_57 = arith.constant 3.200000e+01 : f32
    %214 = vector.broadcast %cst_57 : f32 to vector<16x1xf32>
    %215 = arith.divf %213, %214 : vector<16x1xf32>
    %216 = vector.broadcast %215 : vector<16x1xf32> to vector<16x32xf32>
    %217 = arith.subf %211, %216 : vector<16x32xf32>
    %218 = arith.mulf %217, %217 : vector<16x32xf32>
    %cst_58 = arith.constant dense<0.000000e+00> : vector<16xf32>
    %219 = vector.multi_reduction <add>, %218, %cst_58 [1] : vector<16x32xf32> to vector<16xf32>
    %220 = vector.shape_cast %219 : vector<16xf32> to vector<16x1xf32>
    %cst_59 = arith.constant 0.0322580636 : f32
    %221 = vector.broadcast %cst_59 : f32 to vector<16x1xf32>
    %222 = arith.mulf %220, %221 : vector<16x1xf32>
    %223 = math.sqrt %222 : vector<16x1xf32>
    %cst_60 = arith.constant 9.99999997E-7 : f32
    %224 = vector.broadcast %cst_60 : f32 to vector<16x1xf32>
    %225 = arith.addf %223, %224 : vector<16x1xf32>
    %226 = tpu.reciprocal %225 {approx = true} : vector<16x1xf32> -> vector<16x1xf32>
    %227 = vector.broadcast %215 : vector<16x1xf32> to vector<16x32xf32>
    %228 = arith.subf %211, %227 : vector<16x32xf32>
    %229 = vector.broadcast %131 : vector<1x32xf32> to vector<16x32xf32>
    %230 = arith.mulf %229, %228 : vector<16x32xf32>
    %231 = vector.broadcast %226 : vector<16x1xf32> to vector<16x32xf32>
    %232 = arith.mulf %230, %231 : vector<16x32xf32>
    %233 = vector.broadcast %132 : vector<1x32xf32> to vector<16x32xf32>
    %234 = arith.addf %232, %233 : vector<16x32xf32>
    %c1_61 = arith.constant 1 : index
    %c0_62 = arith.constant 0 : index
    %c0_63 = arith.constant 0 : index
    %235 = vector.load %arg4[%c1_61, %c0_62, %c0_63] : memref<2x32x64xf32, #tpu.memory_space<vmem>>, vector<1x32x64xf32>
    %236 = vector.shape_cast %235 : vector<1x32x64xf32> to vector<32x64xf32>
    %cst_64 = arith.constant dense<0.000000e+00> : vector<16x64xf32>
    %237 = tpu.matmul %234, %236, %cst_64 {dimension_numbers = #tpu.dot_dimension_numbers<[1], [0], [0], [1], [0, 0, 1, 1], [], []>} : vector<16x32xf32>, vector<32x64xf32>, vector<16x64xf32> -> vector<16x64xf32>
    %238 = vector.broadcast %133 : vector<1x64xf32> to vector<16x64xf32>
    %239 = arith.addf %237, %238 : vector<16x64xf32>
    %cst_65 = arith.constant 0.000000e+00 : f32
    %240 = vector.broadcast %cst_65 : f32 to vector<16x64xf32>
    %241 = arith.maximumf %239, %240 : vector<16x64xf32>
    %c1_66 = arith.constant 1 : index
    %c0_67 = arith.constant 0 : index
    %c0_68 = arith.constant 0 : index
    %242 = vector.load %arg5[%c1_66, %c0_67, %c0_68] : memref<2x64x32xf32, #tpu.memory_space<vmem>>, vector<1x64x32xf32>
    %243 = vector.shape_cast %242 : vector<1x64x32xf32> to vector<64x32xf32>
    %cst_69 = arith.constant dense<0.000000e+00> : vector<16x32xf32>
    %244 = tpu.matmul %241, %243, %cst_69 {dimension_numbers = #tpu.dot_dimension_numbers<[1], [0], [0], [1], [0, 0, 1, 1], [], []>} : vector<16x64xf32>, vector<64x32xf32>, vector<16x32xf32> -> vector<16x32xf32>
    %245 = arith.addf %211, %244 : vector<16x32xf32>
    %246 = vector.broadcast %134 : vector<1x32xf32> to vector<16x32xf32>
    %247 = arith.addf %245, %246 : vector<16x32xf32>
    %c0_70 = arith.constant 0 : index
    %c0_71 = arith.constant 0 : index
    %248 = vector.load %arg7[%c0_70, %c0_71] : memref<16x32xf32, #tpu.memory_space<vmem>>, vector<16x32xf32>
    tpu.vector_store %arg7[%c0_70, %c0_71], %247 {strides = array<i32>} : memref<16x32xf32, #tpu.memory_space<vmem>>, vector<16x32xf32>,
    return
  }
}

</mosaic_0001>

<bundles_post_ra>
// kernel: encoder_forward.1
= control target key start
LH: loop header
LB: loop body
LE: loop exit
PB: predicated region body
PF: predicated region fallthrough
CT: control target
= control target key end

     0   :  { %12 = vsyncpa [#allocation3], 0  ;;  %s5235_s0 = inlined_call_operand.hbm [shape: f32[16,32], index: 0, kind: input, shape index: {}]   ;;  %s5236_s1 = inlined_call_operand.vmem [shape: f32[8,8,8], index: 1, kind: input, shape index: {}]   ;;  %s5237_s2 = inlined_call_operand.vmem [shape: f32[2,32,96], index: 2, kind: input, shape index: {}]   ;;  %s5238_s3 = inlined_call_operand.vmem [shape: f32[2,32,32], index: 3, kind: input, shape index: {}]   ;;  %s5239_s4 = inlined_call_operand.hbm [shape: f32[2,32,64], index: 4, kind: input, shape index: {}]   ;;  %s5240_s5 = inlined_call_operand.vmem [shape: f32[2,64,32], index: 5, kind: input, shape index: {}]   ;;  %s5241_s6 = inlined_call_operand.vmem [shape: f32[2,8,128], index: 6, kind: input, shape index: {}]   ;;  %s5242_s7 = inlined_call_operand.hbm [shape: f32[16,32], index: 7, kind: output, shape index: {}]  }
   0x1   :  { %13 = vsyncpa [#allocation6], 0 }
   0x2   :  { %14 = vsyncpa [#allocation4], 0  ;;  %s4469_s24 = smov [#allocation2]   ;;  %s4397_s28 = scalar_lea.hbm %s5235_s0, 256 }
   0x3   :  { %s20_s25 = sshll.u32 %s4469_s24, 4  ;;  %p4398_p0 = scmp.ne.s32.totalorder %s5235_s0, %s4397_s28  ;;  %s21_s25 = int_to_ptr.vmem [resolvable:$true] %s20_s25 }
   0x4   :  { %p4401_p1 = scmp.lt.u32.totalorder %s4397_s28, %s5235_s0 }
   0x6   :  { %p4403_p2 = pnand %p4401_p1, %p4398_p0 }
   0x8   :  { %4406 = shalt.err (!%p4403_p2)
}
   0x9   :  { %s4407_s10 = scalar_lea.vmem %s21_s25, 256  ;;  %p4412_p4 = scmp.lt.s32.totalorder %s21_s25, %s21_s25 }
   0xa   :  { %p4408_p3 = scmp.ne.s32.totalorder %s21_s25, %s4407_s10  ;;  %p4413_p5 = scmp.lt.s32.totalorder %s4407_s10, %s4407_s10 }
   0xc   :  { %p4414_p6 = por %p4413_p5, %p4412_p4 }
   0xe   :  { %p4415_p7 = pnand %p4414_p6, %p4408_p3 }
  0x10   :  { %4418 = shalt.err (!%p4415_p7)
}
  0x11   :  { %s4470_s11 = smov 128   ;;  %s4471_s12 = smov 8  }
  0x12   :  { %26 = dma.hbm_to_vmem [thread:$0]  %s5235_s0, 256, %s21_s25, [#allocation3], %s4470_s11, %s4470_s11, %s4471_s12  }
  0x13   :  { %s4472_s15 = smov [#allocation5]   ;;  %s4419_s19 = scalar_lea.hbm %s5239_s4, 1024 }
  0x14   :  { %s38_s16 = sshll.u32 %s4472_s15, 4  ;;  %p4420_p8 = scmp.ne.s32.totalorder %s5239_s4, %s4419_s19  ;;  %s39_s16 = int_to_ptr.vmem [resolvable:$true] %s38_s16 }
  0x15   :  { %p4423_p9 = scmp.lt.u32.totalorder %s4419_s19, %s5239_s4 }
  0x17   :  { %p4425_p10 = pnand %p4423_p9, %p4420_p8 }
  0x19   :  { %4428 = shalt.err (!%p4425_p10)
}
  0x1a   :  { %s4429_s24 = scalar_lea.vmem %s39_s16, 1024  ;;  %p4434_p12 = scmp.lt.s32.totalorder %s39_s16, %s39_s16 }
  0x1b   :  { %p4430_p11 = scmp.ne.s32.totalorder %s39_s16, %s4429_s24  ;;  %p4435_p13 = scmp.lt.s32.totalorder %s4429_s24, %s4429_s24 }
  0x1d   :  { %p4436_p0 = por %p4435_p13, %p4434_p12 }
  0x1f   :  { %p4437_p1 = pnand %p4436_p0, %p4430_p11 }
  0x21   :  { %4440 = shalt.err (!%p4437_p1)
}
  0x22   :  { %44 = dma.hbm_to_vmem [thread:$0]  %s5239_s4, 1024, %s39_s16, [#allocation6], %s4470_s11, %s4470_s11, %s4471_s12  }
  0x23   :  { %4463 = dma.done.wait [#allocation3], 256  }
  0x24   :  { %4464 = vsyncadd [#allocation3], 4294967040 }
  0x25   :  { %4465 = dma.done.wait [#allocation6], 1024  }
  0x26   :  { %4466 = vsyncadd [#allocation6], 4294966272  ;;  %vm66_vm0 = vcmask 261120   ;;  %v4553_v0 = vld [vmem:[#allocation2] sm:$0xff]  ;;  %v4555_v1 = vld [vmem:[#allocation2 + $0x8] sm:$0xff]  ;;  %v106_v25 = vlaneseq  ;;  %v4473_v53 = vmov 0.0  }
  0x27   :  { %v67_v2 = vsel %vm66_vm0, %v4553_v0, 0.0  ;;  %v70_v3 = vsel %vm66_vm0, %v4555_v1, 0.0  ;;  %v120_v14 = vld [vmem:[%s5237_s2] sm:$0xff]  ;;  %v121_v15 = vld [vmem:[%s5237_s2 + $0x8] sm:$0xff]  ;;  %v122_v16 = vld [vmem:[%s5237_s2 + $0x10] sm:$0xff]  ;;  %3964 = vmatprep.subr.mxu0 %v4473_v53  ;;  %vm4474_vm5 = vmmov 0  }
  0x28   :  { %68 = vadd.xlane.f32.xlu0 %v67_v2  ;;  %v4207_v17 = vpack.c.bf16 %v121_v15, %v120_v14  ;;  %v123_v18 = vld [vmem:[%s5237_s2 + $0x18] sm:$0xff]  ;;  %v4577_v30 = vshrl.u32 %v106_v25, 7  ;;  %v4583_v38 = vld [vmem:[%s5241_s6] sm:$0xff]  ;;  %3966 = vmatprep.mubr.msk.f32.mxu0 %vm4474_vm5, %v4473_v53  ;;  %s4475_s14 = smov 120   ;;  %s4476_s15 = smov 112   ;;  %vm225_vm6 = vcmask 64512  }
  0x29   :  { %v4211_v19 = vpack.c.bf16 %v123_v18, %v122_v16  ;;  %s4477_s16 = smov 104   ;;  %s4478_s17 = smov 96   ;;  %v4706_v15 = vld [vmem:[%s5236_s1 + $0x8] sm:$0xff]  ;;  %vm1554_vm7 = vcmask 130048   ;;  %vm1557_vm8 = vcmask 195584   ;;  %vm1804_vm13 = vcmask 523264  }
  0x2a   :  { %4208 = vmatprep.subr.bf16.mxu1 %v4207_v17  ;;  %v108_v36 = vsub.s32 0, %v4577_v30  ;;  %v116_v41 = vsub.s32 1, %v4577_v30  ;;  %v126_v51 = vsub.s32 2, %v4577_v30  ;;  %s4480_s23 = smov 16   ;;  %s4481_s24 = smov 24  }
  0x2b   :  { %4210 = vmatpush3.bf16.msra.mxu1 %v4207_v17 }
  0x2c   :  { %71 = vadd.xlane.f32.xlu0 %v70_v3  ;;  %4212 = vmatprep.subr.bf16.mxu1 %v4211_v19  ;;  %v109_v40 = vrot.slane %v4583_v38, %v108_v36  ;;  %v117_v43 = vrot.slane %v4583_v38, %v116_v41  ;;  %v127_v52 = vrot.slane %v4583_v38, %v126_v51 }
  0x2f   :  { %4214 = vmatpush3.bf16.msra.mxu1 %v4211_v19 }
  0x30   :  { %3954 = vmatprep.subr.mxu1 %v4473_v53 }
  0xb5   :  { %v69_v4 = vpop.xlane.xlu0 %68 }
  0xb6   :  { %v74_v5 = vmul.f32 0.03125, %v69_v4 }
  0xb8   :  { %v76_v6 = vsub.f32 %v4553_v0, %v74_v5 }
  0xb9   :  { %v72_v7 = vpop.xlane.xlu0 %71 }
  0xba   :  { %v75_v8 = vmul.f32 0.03125, %v72_v7  ;;  %v78_v9 = vmul.f32 %v76_v6, %v76_v6  ;;  %v110_v42 = vmul.f32 %v109_v40, %v76_v6 }
  0xbc   :  { %v77_v10 = vsub.f32 %v4555_v1, %v75_v8  ;;  %v80_v11 = vsel %vm66_vm0, %v78_v9, 0.0 }
  0xbd   :  { %81 = vadd.xlane.f32.xlu1 %v80_v11 }
  0xbe   :  { %v79_v12 = vmul.f32 %v77_v10, %v77_v10  ;;  %v111_v46 = vmul.f32 %v109_v40, %v77_v10  ;;  %v4699_v10 = vld [vmem:[%s5236_s1] sm:$0xff] }
  0xc0   :  { %v83_v13 = vsel %vm66_vm0, %v79_v12, 0.0 }
  0xc1   :  { %84 = vadd.xlane.f32.xlu1 %v83_v13 }
 0x14a   :  { %v82_v20 = vpop.xlane.xlu1 %81 }
 0x14b   :  { %v86_v21 = vmul.f32 0.032258064, %v82_v20  ;;  %v4713_v20 = vld [vmem:[%s5236_s1 + $0x18] sm:$0xff] }
 0x14d   :  { %4301 = vrsqrt.f32 %v86_v21  ;;  %vm90_vm1 = vcmp.eq.f32.partialorder %v86_v21, inf  ;;  %v93_v27 = vand.u32 2147483648, %v86_v21  ;;  %vm92_vm2 = vcmp.eq.f32.partialorder %v86_v21, 0.0 }
 0x14e   :  { %v85_v22 = vpop.xlane.xlu1 %84 }
 0x14f   :  { %v87_v23 = vmul.f32 0.032258064, %v85_v22  ;;  %v4718_v22 = vld [vmem:[%s5236_s1 + $0x10] sm:$0xff] }
 0x151   :  { %4303 = vrsqrt.f32 %v87_v23  ;;  %vm97_vm3 = vcmp.eq.f32.partialorder %v87_v23, inf  ;;  %v100_v34 = vand.u32 2147483648, %v87_v23  ;;  %vm99_vm4 = vcmp.eq.f32.partialorder %v87_v23, 0.0 }
 0x157   :  { %v4302_v24 = vpop.eup %4301 }
 0x158   :  { %v89_v26 = vmul.f32 %v4302_v24, %v86_v21 }
 0x15a   :  { %v91_v28 = vsel %vm90_vm1, %v86_v21, %v89_v26 }
 0x15b   :  { %v4304_v29 = vpop.eup %4303  ;;  %v94_v31 = vsel %vm92_vm2, %v93_v27, %v91_v28 }
 0x15c   :  { %v96_v32 = vmul.f32 %v4304_v29, %v87_v23  ;;  %v102_v33 = vadd.f32 1e-06, %v94_v31  ;;  %v4726_v29 = vld [vmem:[%s5236_s1 + $0x20] sm:$0xff] }
 0x15e   :  { %v98_v35 = vsel %vm97_vm3, %v87_v23, %v96_v32  ;;  %4305 = vrcp.f32 %v102_v33  ;;  %v4731_v33 = vld [vmem:[%s5236_s1 + $0x28] sm:$0xff] }
 0x15f   :  { %v101_v37 = vsel %vm99_vm4, %v100_v34, %v98_v35 }
 0x160   :  { %v103_v39 = vadd.f32 1e-06, %v101_v37 }
 0x162   :  { %4307 = vrcp.f32 %v103_v39  ;;  %v4738_v39 = vld [vmem:[%s5236_s1 + $0x30] sm:$0xff] }
 0x168   :  { %v4306_v44 = vpop.eup %4305 }
 0x169   :  { %v112_v45 = vmul.f32 %v4306_v44, %v110_v42 }
 0x16b   :  { %v118_v47 = vadd.f32 %v117_v43, %v112_v45  ;;  %v4744_v45 = vld [vmem:[%s5236_s1 + $0x38] sm:$0xff]  ;;  %s4479_s1 = smov 64  }
 0x16c   :  { %v4308_v48 = vpop.eup %4307 }
 0x16d   :  { %v113_v49 = vmul.f32 %v4308_v48, %v111_v46  ;;  %3951 = vmatprep.mubr.msk.f32.mxu1 %vm66_vm0, %v118_v47 }
 0x16f   :  { %v119_v50 = vadd.f32 %v117_v43, %v113_v49 }
 0x171   :  { %3952 = vmatmul.mubr.msk.f32.vlgmr.msra.gmra.mrb[0].mxu1 %vm66_vm0, %v119_v50 }
 0x172   :  { %3956 = vmatprep.mubr.msk.f32.mxu1 %vm4474_vm5, %v4473_v53 }
 0x244   :  { %v3953_v54 = vpop.f32.mrb[0].mxu1 }
 0x245   :  { %v4604_v55 = vadd.f32 %v3953_v54, %v127_v52  ;;  %v200_v56 = vpop.f32.mrb[1].mxu1 }
 0x246   :  { %v4606_v57 = vadd.f32 %v200_v56, %v127_v52 }
 0x247   :  { %213 = vrot.lane.b32.xlu1 %v4604_v55, %s4475_s14 }
 0x248   :  { %211 = vrot.lane.b32.xlu0 %v4606_v57, %s4475_s14 }
 0x24b   :  { %215 = vrot.lane.b32.xlu1 %v4606_v57, %s4476_s15 }
 0x24c   :  { %219 = vrot.lane.b32.xlu0 %v4606_v57, %s4477_s16 }
 0x24f   :  { %217 = vrot.lane.b32.xlu1 %v4604_v55, %s4476_s15 }
 0x250   :  { %223 = vrot.lane.b32.xlu0 %v4606_v57, %s4478_s17 }
 0x253   :  { %221 = vrot.lane.b32.xlu1 %v4604_v55, %s4477_s16 }
 0x257   :  { %300 = vrot.lane.b32.xlu1 %v4604_v55, %s4478_s17 }
 0x2b9   :  { %v4624_v58 = vpop.permute.xlu1 %213 }
 0x2ba   :  { %452 = vrot.lane.b32.xlu1 %v4624_v58, %s4478_s17  ;;  %v4628_v59 = vpop.permute.xlu0 %211 }
 0x2bb   :  { %376 = vrot.lane.b32.xlu0 %v4628_v59, %s4478_s17 }
 0x2bd   :  { %v4632_v60 = vpop.permute.xlu1 %215 }
 0x2be   :  { %v4634_v61 = vpop.permute.xlu0 %219 }
 0x2bf   :  { %528 = vrot.lane.b32.xlu0 %v4632_v60, %s4478_s17 }
 0x2c1   :  { %v4638_v62 = vpop.permute.xlu1 %217 }
 0x2c2   :  { %604 = vrot.lane.b32.xlu1 %v4638_v62, %s4478_s17  ;;  %v224_v63 = vpop.permute.xlu0 %223 }
 0x2c3   :  { %680 = vrot.lane.b32.xlu0 %v4634_v61, %s4478_s17  ;;  %3955 = vmatpush3.xpose.msk.msra.mxu1 %vm225_vm6, %v224_v63 }
 0x2c4   :  { %3959 = vmatprep.subr.mxu1 %v4473_v53 }
 0x2c5   :  { %v4646_v2 = vpop.permute.xlu1 %221 }
 0x2c6   :  { %756 = vrot.lane.b32.xlu1 %v4646_v2, %s4478_s17  ;;  %3957 = vmatmul.mubr.msk.f32.vlgmr.msra.gmra.mrb[2].mxu1 %vm225_vm6, %v4606_v57 }
 0x2c7   :  { %3961 = vmatprep.mubr.msk.f32.mxu1 %vm4474_vm5, %v4473_v53 }
 0x2c9   :  { %v301_v3 = vpop.permute.xlu1 %300 }
 0x2ca   :  { %3960 = vmatpush3.xpose.msk.msra.mxu1 %vm225_vm6, %v301_v3 }
 0x2cb   :  { %3969 = vmatprep.subr.mxu1 %v4473_v53 }
 0x2cd   :  { %3962 = vmatmul.mubr.msk.f32.vlgmr.msra.gmra.mrb[4].mxu1 %vm225_vm6, %v4604_v55 }
 0x2ce   :  { %3971 = vmatprep.mubr.msk.f32.mxu1 %vm4474_vm5, %v4473_v53 }
 0x32c   :  { %v453_v4 = vpop.permute.xlu1 %452 }
 0x32d   :  { %3970 = vmatpush3.xpose.msk.msra.mxu1 %vm225_vm6, %v453_v4  ;;  %v377_v5 = vpop.permute.xlu0 %376 }
 0x32e   :  { %3965 = vmatpush3.xpose.msk.msra.mxu0 %vm225_vm6, %v377_v5  ;;  %3979 = vmatprep.subr.mxu1 %v4473_v53 }
 0x32f   :  { %3974 = vmatprep.subr.mxu0 %v4473_v53 }
 0x330   :  { %3972 = vmatmul.mubr.msk.f32.vlgmr.msra.gmra.mrb[6].mxu1 %vm225_vm6, %v4624_v58 }
 0x331   :  { %3967 = vmatmul.mubr.msk.f32.vlgmr.msra.gmra.mrb[0].mxu0 %vm225_vm6, %v4628_v59  ;;  %v529_v6 = vpop.permute.xlu0 %528  ;;  %3981 = vmatprep.mubr.msk.f32.mxu1 %vm4474_vm5, %v4473_v53 }
 0x332   :  { %3975 = vmatpush3.xpose.msk.msra.mxu0 %vm225_vm6, %v529_v6  ;;  %3976 = vmatprep.mubr.msk.f32.mxu0 %vm4474_vm5, %v4473_v53 }
 0x333   :  { %3984 = vmatprep.subr.mxu0 %v4473_v53 }
 0x334   :  { %v605_v7 = vpop.permute.xlu1 %604 }
 0x335   :  { %3977 = vmatmul.mubr.msk.f32.vlgmr.msra.gmra.mrb[2].mxu0 %vm225_vm6, %v4632_v60  ;;  %3980 = vmatpush3.xpose.msk.msra.mxu1 %vm225_vm6, %v605_v7  ;;  %v681_v8 = vpop.permute.xlu0 %680 }
 0x336   :  { %3985 = vmatpush3.xpose.msk.msra.mxu0 %vm225_vm6, %v681_v8  ;;  %3986 = vmatprep.mubr.msk.f32.mxu0 %vm4474_vm5, %v4473_v53 }
 0x337   :  { %3989 = vmatprep.subr.mxu1 %v4473_v53  ;;  %3994 = vmatprep.subr.mxu0 %v4473_v53 }
 0x338   :  { %v757_v9 = vpop.permute.xlu1 %756  ;;  %3982 = vmatmul.mubr.msk.f32.vlgmr.msra.gmra.mrb[8].mxu1 %vm225_vm6, %v4638_v62 }
 0x339   :  { %3987 = vmatmul.mubr.msk.f32.vlgmr.msra.gmra.mrb[4].mxu0 %vm225_vm6, %v4634_v61  ;;  %3990 = vmatpush3.xpose.msk.msra.mxu1 %vm225_vm6, %v757_v9 }
 0x33a   :  { %3991 = vmatprep.mubr.msk.f32.mxu1 %vm4474_vm5, %v4473_v53  ;;  %3999 = vmatprep.subr.mxu1 %v4473_v53 }
 0x33b   :  { %3996 = vmatprep.mubr.msk.f32.mxu0 %vm4474_vm5, %v4473_v53 }
 0x33c   :  { %3992 = vmatmul.mubr.msk.f32.vlgmr.msra.gmra.mrb[10].mxu1 %vm225_vm6, %v4646_v2 }
 0x33d   :  { %4001 = vmatprep.mubr.msk.f32.mxu1 %vm4474_vm5, %v4473_v53 }
 0x399   :  { %v296_v11 = vpop.f32.mrb[2].mxu1 }
 0x39a   :  { %v297_v12 = vadd.f32 %v296_v11, %v4699_v10  ;;  %v3958_v13 = vpop.f32.mrb[3].mxu1 }
 0x39c   :  { %v832_v14 = vsel %vm225_vm6, %v297_v12, -inf }
 0x39d   :  { %833 = vmax.xlane.f32.xlu0 %v832_v14 }
 0x3a0   :  { %v372_v16 = vpop.f32.mrb[4].mxu1 }
 0x3a1   :  { %v373_v17 = vadd.f32 %v372_v16, %v4706_v15  ;;  %v3963_v18 = vpop.f32.mrb[5].mxu1 }
 0x3a3   :  { %v835_v19 = vsel %vm225_vm6, %v373_v17, -inf }
 0x3a4   :  { %836 = vmax.xlane.f32.xlu1 %v835_v19 }
 0x403   :  { %v524_v21 = vpop.f32.mrb[6].mxu1 }
 0x404   :  { %v525_v23 = vadd.f32 %v524_v21, %v4713_v20  ;;  %v448_v24 = vpop.f32.mrb[0].mxu0  ;;  %v3973_v25 = vpop.f32.mrb[7].mxu1 }
 0x405   :  { %v3968_v26 = vpop.f32.mrb[1].mxu0  ;;  %v449_v27 = vadd.f32 %v448_v24, %v4718_v22 }
 0x406   :  { %v841_v28 = vsel %vm225_vm6, %v525_v23, -inf }
 0x407   :  { %842 = vmax.xlane.f32.xlu0 %v841_v28  ;;  %v838_v35 = vsel %vm225_vm6, %v449_v27, -inf }
 0x408   :  { %v600_v31 = vpop.f32.mrb[2].mxu0 }
 0x409   :  { %v3978_v32 = vpop.f32.mrb[3].mxu0  ;;  %v601_v34 = vadd.f32 %v600_v31, %v4726_v29 }
 0x40b   :  { %v676_v37 = vpop.f32.mrb[8].mxu1  ;;  %839 = vmax.xlane.f32.xlu0 %v838_v35  ;;  %v844_v48 = vsel %vm225_vm6, %v601_v34, -inf }
 0x40c   :  { %v677_v40 = vadd.f32 %v676_v37, %v4731_v33  ;;  %v3983_v42 = vpop.f32.mrb[9].mxu1  ;;  %v752_v43 = vpop.f32.mrb[4].mxu0 }
 0x40d   :  { %v3988_v44 = vpop.f32.mrb[5].mxu0  ;;  %v753_v46 = vadd.f32 %v752_v43, %v4738_v39 }
 0x40e   :  { %v847_v47 = vsel %vm225_vm6, %v677_v40, -inf }
 0x40f   :  { %848 = vmax.xlane.f32.xlu1 %v847_v47  ;;  %v828_v49 = vpop.f32.mrb[10].mxu1  ;;  %845 = vmax.xlane.f32.xlu0 %v844_v48  ;;  %v850_v56 = vsel %vm225_vm6, %v753_v46, -inf }
 0x410   :  { %v829_v50 = vadd.f32 %v828_v49, %v4744_v45  ;;  %v3993_v52 = vpop.f32.mrb[11].mxu1 }
 0x412   :  { %v853_v54 = vsel %vm225_vm6, %v829_v50, -inf }
 0x413   :  { %854 = vmax.xlane.f32.xlu1 %v853_v54  ;;  %851 = vmax.xlane.f32.xlu0 %v850_v56 }
 0x424   :  { %996 = vrot.lane.b32.xlu1 %v4604_v55, %s4479_s1 }
 0x428   :  { %1072 = vrot.lane.b32.xlu1 %v4628_v59, %s4479_s1 }
 0x429   :  { %920 = vrot.lane.b32.xlu0 %v4606_v57, %s4479_s1 }
 0x42a   :  { %v834_v63 = vpop.xlane.xlu0 %833 }
 0x42b   :  { %v856_v3 = vsub.f32 %v297_v12, %v834_v63 }
 0x42c   :  { %1148 = vrot.lane.b32.xlu1 %v4624_v58, %s4479_s1 }
 0x42d   :  { %1224 = vrot.lane.b32.xlu0 %v4632_v60, %s4479_s1  ;;  %v864_v4 = vmul.f32 1.442695, %v856_v3 }
 0x42f   :  { %4309 = vpow2.f32 %v864_v4 }
 0x430   :  { %1300 = vrot.lane.b32.xlu1 %v4638_v62, %s4479_s1 }
 0x431   :  { %v837_v5 = vpop.xlane.xlu1 %836 }
 0x432   :  { %v857_v55 = vsub.f32 %v373_v17, %v837_v5 }
 0x434   :  { %v866_v6 = vmul.f32 1.442695, %v857_v55 }
 0x436   :  { %4311 = vpow2.f32 %v866_v6 }
 0x439   :  { %v4764_v59 = vpop.eup %4309 }
 0x43a   :  { %v880_v57 = vsel %vm225_vm6, %v4764_v59, 0.0 }
 0x440   :  { %v4768_v58 = vpop.eup %4311 }
 0x441   :  { %v883_v60 = vsel %vm225_vm6, %v4768_v58, 0.0 }
 0x44c   :  { %881 = vadd.xlane.f32.xlu0 %v880_v57 }
 0x454   :  { %884 = vadd.xlane.f32.xlu1 %v883_v60 }
 0x494   :  { %v843_v62 = vpop.xlane.xlu0 %842 }
 0x495   :  { %v859_v7 = vsub.f32 %v525_v23, %v843_v62 }
 0x497   :  { %v870_v8 = vmul.f32 1.442695, %v859_v7 }
 0x498   :  { %v840_v9 = vpop.xlane.xlu0 %839 }
 0x499   :  { %4313 = vpow2.f32 %v870_v8  ;;  %v858_v11 = vsub.f32 %v449_v27, %v840_v9 }
 0x49b   :  { %v868_v12 = vmul.f32 1.442695, %v858_v11 }
 0x49c   :  { %v849_v13 = vpop.xlane.xlu1 %848  ;;  %v846_v14 = vpop.xlane.xlu0 %845 }
 0x49d   :  { %4315 = vpow2.f32 %v868_v12  ;;  %v861_v16 = vsub.f32 %v677_v40, %v849_v13  ;;  %v860_v17 = vsub.f32 %v601_v34, %v846_v14 }
 0x49f   :  { %v874_v18 = vmul.f32 1.442695, %v861_v16  ;;  %v872_v19 = vmul.f32 1.442695, %v860_v17 }
 0x4a0   :  { %v855_v21 = vpop.xlane.xlu1 %854  ;;  %v852_v24 = vpop.xlane.xlu0 %851 }
 0x4a1   :  { %4317 = vpow2.f32 %v874_v18  ;;  %v863_v25 = vsub.f32 %v829_v50, %v855_v21  ;;  %v862_v26 = vsub.f32 %v753_v46, %v852_v24 }
 0x4a2   :  { %4319 = vpow2.f32 %v872_v19 }
 0x4a3   :  { %v4314_v28 = vpop.eup %4313  ;;  %v878_v23 = vmul.f32 1.442695, %v863_v25  ;;  %v876_v31 = vmul.f32 1.442695, %v862_v26 }
 0x4a4   :  { %v997_v32 = vpop.permute.xlu1 %996  ;;  %v921_v35 = vpop.permute.xlu0 %920  ;;  %v889_v27 = vsel %vm225_vm6, %v4314_v28, 0.0 }
 0x4a5   :  { %4321 = vpow2.f32 %v878_v23  ;;  %4000 = vmatpush3.msra.mxu1 %v997_v32  ;;  %890 = vadd.xlane.f32.xlu1 %v889_v27  ;;  %v1561_v32 = vld [vmem:[%s5238_s3 + $0x8] sm:$0xff]  ;;  %v1562_v27 = vld [vmem:[%s5238_s3 + $0x10] sm:$0xff] }
 0x4a6   :  { %4323 = vpow2.f32 %v876_v31  ;;  %3995 = vmatpush3.msra.mxu0 %v921_v35  ;;  %4009 = vmatprep.subr.mxu1 %v4473_v53  ;;  %v1560_v31 = vld [vmem:[%s5238_s3] sm:$0xff] }
 0x4a7   :  { %v4316_v34 = vpop.eup %4315  ;;  %4004 = vmatprep.subr.mxu0 %v4473_v53  ;;  %v4215_v35 = vpack.c.bf16 %v1561_v32, %v1560_v31  ;;  %v1705_v31 = vld [vmem:[#allocation5] sm:$0xff]  ;;  %v1706_v32 = vld [vmem:[#allocation5 + $0x8] sm:$0xff] }
 0x4a8   :  { %v886_v37 = vsel %vm225_vm6, %v4316_v34, 0.0  ;;  %v1073_v50 = vpop.permute.xlu1 %1072  ;;  %v1225_v52 = vpop.permute.xlu0 %1224 }
 0x4a9   :  { %887 = vadd.xlane.f32.xlu0 %v886_v37 }
 0x4ab   :  { %v4318_v40 = vpop.eup %4317 }
 0x4ac   :  { %v4320_v42 = vpop.eup %4319  ;;  %v895_v43 = vsel %vm225_vm6, %v4318_v40, 0.0  ;;  %v1149_v54 = vpop.permute.xlu1 %1148 }
 0x4ad   :  { %896 = vadd.xlane.f32.xlu1 %v895_v43  ;;  %v892_v44 = vsel %vm225_vm6, %v4320_v42, 0.0 }
 0x4ae   :  { %893 = vadd.xlane.f32.xlu0 %v892_v44 }
 0x4af   :  { %v4778_v46 = vpop.eup %4321 }
 0x4b0   :  { %v4780_v47 = vpop.eup %4323  ;;  %v901_v48 = vsel %vm225_vm6, %v4778_v46, 0.0  ;;  %v1301_v63 = vpop.permute.xlu1 %1300 }
 0x4b1   :  { %902 = vadd.xlane.f32.xlu1 %v901_v48  ;;  %v898_v49 = vsel %vm225_vm6, %v4780_v47, 0.0 }
 0x4b2   :  { %899 = vadd.xlane.f32.xlu0 %v898_v49 }
 0x4c2   :  { %1452 = vrot.lane.b32.xlu1 %v4646_v2, %s4479_s1 }
 0x4c8   :  { %1376 = vrot.lane.b32.xlu0 %v4634_v61, %s4479_s1 }
 0x4d9   :  { %v882_v56 = vpop.xlane.xlu0 %881 }
 0x4da   :  { %4325 = vrcp.f32 %v882_v56 }
 0x4e1   :  { %v885_v3 = vpop.xlane.xlu1 %884 }
 0x4e2   :  { %4327 = vrcp.f32 %v885_v3 }
 0x4e4   :  { %v4326_v4 = vpop.eup %4325 }
 0x4e5   :  { %v912_v5 = vmul.f32 %v4326_v4, %v4764_v59 }
 0x4e7   :  { %3997 = vmatmul.mubr.msk.f32.vlgmr.msra.gmra.mrb[6].mxu0 %vm225_vm6, %v912_v5 }
 0x4e8   :  { %4005 = vmatpush3.msra.mxu0 %v1073_v50  ;;  %4006 = vmatprep.mubr.msk.f32.mxu0 %vm4474_vm5, %v4473_v53 }
 0x4e9   :  { %4014 = vmatprep.subr.mxu0 %v4473_v53 }
 0x4ec   :  { %v4328_v61 = vpop.eup %4327 }
 0x4ed   :  { %v913_v2 = vmul.f32 %v4328_v61, %v4768_v58 }
 0x4ef   :  { %4002 = vmatmul.mubr.msk.f32.vlgmr.msra.gmra.mrb[12].mxu1 %vm225_vm6, %v913_v2 }
 0x4f0   :  { %4010 = vmatpush3.msra.mxu1 %v1149_v54  ;;  %4011 = vmatprep.mubr.msk.f32.mxu1 %vm4474_vm5, %v4473_v53 }
 0x4f1   :  { %4019 = vmatprep.subr.mxu1 %v4473_v53 }
 0x532   :  { %v891_v55 = vpop.xlane.xlu1 %890 }
 0x533   :  { %4329 = vrcp.f32 %v891_v55 }
 0x536   :  { %v888_v6 = vpop.xlane.xlu0 %887 }
 0x537   :  { %4331 = vrcp.f32 %v888_v6 }
 0x53a   :  { %v897_v59 = vpop.xlane.xlu1 %896 }
 0x53b   :  { %4333 = vrcp.f32 %v897_v59  ;;  %v894_v57 = vpop.xlane.xlu0 %893 }
 0x53c   :  { %4335 = vrcp.f32 %v894_v57 }
 0x53d   :  { %v4330_v60 = vpop.eup %4329 }
 0x53e   :  { %v915_v62 = vmul.f32 %v4330_v60, %v4314_v28  ;;  %v903_v7 = vpop.xlane.xlu1 %902 }
 0x53f   :  { %4337 = vrcp.f32 %v903_v7  ;;  %v900_v58 = vpop.xlane.xlu0 %899  ;;  %v1649_v7 = vsub.s32 3, %v4577_v30 }
 0x540   :  { %4339 = vrcp.f32 %v900_v58  ;;  %4012 = vmatmul.mubr.msk.f32.vlgmr.msra.gmra.mrb[14].mxu1 %vm225_vm6, %v915_v62 }
 0x541   :  { %v4332_v8 = vpop.eup %4331  ;;  %4020 = vmatpush3.msra.mxu1 %v1301_v63  ;;  %4021 = vmatprep.mubr.msk.f32.mxu1 %vm4474_vm5, %v4473_v53  ;;  %v1650_v58 = vrot.slane %v4583_v38, %v1649_v7 }
 0x542   :  { %v914_v9 = vmul.f32 %v4332_v8, %v4316_v34  ;;  %4029 = vmatprep.subr.mxu1 %v4473_v53  ;;  %v1453_v16 = vpop.permute.xlu1 %1452  ;;  %v1563_v34 = vld [vmem:[%s5238_s3 + $0x18] sm:$0xff] }
 0x543   :  { %v1377_v18 = vpop.permute.xlu0 %1376  ;;  %v4219_v37 = vpack.c.bf16 %v1563_v34, %v1562_v27  ;;  %v4223_v27 = vpack.c.bf16 %v1706_v32, %v1705_v31  ;;  %v1708_v34 = vld [vmem:[#allocation5 + $0x18] sm:$0xff] }
 0x544   :  { %4007 = vmatmul.mubr.msk.f32.vlgmr.msra.gmra.mrb[8].mxu0 %vm225_vm6, %v914_v9 }
 0x545   :  { %v4334_v11 = vpop.eup %4333  ;;  %4015 = vmatpush3.msra.mxu0 %v1225_v52  ;;  %4016 = vmatprep.mubr.msk.f32.mxu0 %vm4474_vm5, %v4473_v53 }
 0x546   :  { %v4336_v12 = vpop.eup %4335  ;;  %v917_v13 = vmul.f32 %v4334_v11, %v4318_v40  ;;  %4024 = vmatprep.subr.mxu0 %v4473_v53 }
 0x547   :  { %v916_v14 = vmul.f32 %v4336_v12, %v4320_v42 }
 0x548   :  { %4022 = vmatmul.mubr.msk.f32.vlgmr.msra.gmra.mrb[16].mxu1 %vm225_vm6, %v917_v13 }
 0x549   :  { %v4338_v17 = vpop.eup %4337  ;;  %4017 = vmatmul.mubr.msk.f32.vlgmr.msra.gmra.mrb[10].mxu0 %vm225_vm6, %v916_v14  ;;  %4030 = vmatpush3.msra.mxu1 %v1453_v16 }
 0x54a   :  { %v4340_v19 = vpop.eup %4339  ;;  %v919_v21 = vmul.f32 %v4338_v17, %v4778_v46  ;;  %4025 = vmatpush3.msra.mxu0 %v1377_v18  ;;  %4026 = vmatprep.mubr.msk.f32.mxu0 %vm4474_vm5, %v4473_v53 }
 0x54b   :  { %v918_v24 = vmul.f32 %v4340_v19, %v4780_v47  ;;  %4031 = vmatprep.mubr.msk.f32.mxu1 %vm4474_vm5, %v4473_v53  ;;  %4216 = vmatprep.subr.bf16.mxu0 %v4215_v35 }
 0x54c   :  { %4032 = vmatmul.mubr.msk.f32.vlgmr.msra.gmra.mrb[18].mxu1 %vm225_vm6, %v919_v21  ;;  %4224 = vmatprep.subr.bf16.mxu1 %v4223_v27 }
 0x54d   :  { %4027 = vmatmul.mubr.msk.f32.vlgmr.msra.gmra.mrb[12].mxu0 %vm225_vm6, %v918_v24  ;;  %4226 = vmatpush3.bf16.msra.mxu1 %v4223_v27 }
 0x54e   :  { %4218 = vmatpush3.bf16.msra.mxu0 %v4215_v35  ;;  %v1707_v35 = vld [vmem:[#allocation5 + $0x10] sm:$0xff] }
 0x54f   :  { %4220 = vmatprep.subr.bf16.mxu0 %v4219_v37 }
 0x552   :  { %4222 = vmatpush3.bf16.msra.mxu0 %v4219_v37  ;;  %v4227_v37 = vpack.c.bf16 %v1708_v34, %v1707_v35 }
 0x554   :  { %4228 = vmatprep.subr.bf16.mxu1 %v4227_v37 }
 0x555   :  { %4230 = vmatpush3.bf16.msra.mxu1 %v4227_v37 }
 0x5ba   :  { %v992_v25 = vpop.f32.mrb[6].mxu0 }
 0x5bb   :  { %v3998_v26 = vpop.f32.mrb[7].mxu0 }
 0x5c2   :  { %v1068_v28 = vpop.f32.mrb[12].mxu1 }
 0x5c3   :  { %v4003_v23 = vpop.f32.mrb[13].mxu1 }
 0x613   :  { %v1220_v40 = vpop.f32.mrb[14].mxu1 }
 0x614   :  { %1532 = vrot.lane.b32.xlu1 %v1220_v40, %s4471_s12  ;;  %v4013_v42 = vpop.f32.mrb[15].mxu1  ;;  %v1796_v40 = vld [vmem:[%s5240_s5] sm:$0xff] }
 0x615   :  { %v1797_v42 = vld [vmem:[%s5240_s5 + $0x8] sm:$0xff] }
 0x617   :  { %v1144_v43 = vpop.f32.mrb[8].mxu0 }
 0x618   :  { %1530 = vrot.lane.b32.xlu0 %v1144_v43, %s4471_s12  ;;  %v4008_v44 = vpop.f32.mrb[9].mxu0  ;;  %v1798_v43 = vld [vmem:[%s5240_s5 + $0x10] sm:$0xff] }
 0x619   :  { %v4231_v44 = vpack.c.bf16 %v1797_v42, %v1796_v40  ;;  %v1890_v42 = vsub.s32 7, %v4577_v30 }
 0x61b   :  { %v1372_v46 = vpop.f32.mrb[16].mxu1  ;;  %4232 = vmatprep.subr.bf16.mxu0 %v4231_v44 }
 0x61c   :  { %v1296_v47 = vpop.f32.mrb[10].mxu0  ;;  %1540 = vrot.lane.b32.xlu1 %v1372_v46, %s4480_s23  ;;  %v4023_v48 = vpop.f32.mrb[17].mxu1  ;;  %v1799_v46 = vld [vmem:[%s5240_s5 + $0x18] sm:$0xff] }
 0x61d   :  { %1538 = vrot.lane.b32.xlu0 %v1296_v47, %s4480_s23  ;;  %v4018_v49 = vpop.f32.mrb[11].mxu0  ;;  %v4235_v47 = vpack.c.bf16 %v1799_v46, %v1798_v43  ;;  %v1800_v48 = vld [vmem:[%s5240_s5 + $0x20] sm:$0xff]  ;;  %v1891_v43 = vrot.slane %v4583_v38, %v1890_v42 }
 0x61e   :  { %v1801_v49 = vld [vmem:[%s5240_s5 + $0x28] sm:$0xff] }
 0x61f   :  { %v1524_v50 = vpop.f32.mrb[18].mxu1 }
 0x620   :  { %v1448_v52 = vpop.f32.mrb[12].mxu0  ;;  %1548 = vrot.lane.b32.xlu1 %v1524_v50, %s4481_s24  ;;  %v4033_v54 = vpop.f32.mrb[19].mxu1  ;;  %v4239_v50 = vpack.c.bf16 %v1801_v49, %v1800_v48 }
 0x621   :  { %1546 = vrot.lane.b32.xlu0 %v1448_v52, %s4481_s24  ;;  %v4028_v56 = vpop.f32.mrb[13].mxu0 }
 0x686   :  { %v1533_v63 = vpop.permute.xlu1 %1532 }
 0x687   :  { %v1553_v61 = vsel %vm225_vm6, %v1068_v28, %v1533_v63 }
 0x68a   :  { %v1531_v3 = vpop.permute.xlu0 %1530 }
 0x68b   :  { %v1552_v2 = vsel %vm225_vm6, %v992_v25, %v1531_v3 }
 0x68e   :  { %v1541_v4 = vpop.permute.xlu1 %1540 }
 0x68f   :  { %v1539_v5 = vpop.permute.xlu0 %1538  ;;  %v1556_v55 = vsel %vm1554_vm7, %v1553_v61, %v1541_v4 }
 0x690   :  { %v1555_v59 = vsel %vm1554_vm7, %v1552_v2, %v1539_v5 }
 0x692   :  { %v1549_v6 = vpop.permute.xlu1 %1548 }
 0x693   :  { %v1559_v57 = vsel %vm1557_vm8, %v1556_v55, %v1549_v6  ;;  %v1547_v60 = vpop.permute.xlu0 %1546 }
 0x694   :  { %v1558_v62 = vsel %vm1557_vm8, %v1555_v59, %v1547_v60 }
 0x695   :  { %4042 = vmatprep.mubr.msk.f32.mxu0 %vm66_vm0, %v1558_v62  ;;  %v1693_v62 = vsub.s32 4, %v4577_v30 }
 0x696   :  { %4043 = vmatmul.mubr.msk.f32.vlgmr.msra.gmra.mrb[14].mxu0 %vm66_vm0, %v1559_v57 }
 0x697   :  { %4234 = vmatpush3.bf16.msra.mxu0 %v4231_v44 }
 0x698   :  { %4236 = vmatprep.subr.bf16.mxu0 %v4235_v47 }
 0x69b   :  { %4238 = vmatpush3.bf16.msra.mxu0 %v4235_v47 }
 0x69c   :  { %4240 = vmatprep.subr.bf16.mxu0 %v4239_v50 }
 0x69f   :  { %4242 = vmatpush3.bf16.msra.mxu0 %v4239_v50 }
 0x769   :  { %v4044_v8 = vpop.f32.mrb[14].mxu0 }
 0x76a   :  { %v1646_v9 = vadd.f32 %v4044_v8, %v4555_v1  ;;  %v1636_v11 = vpop.f32.mrb[15].mxu0 }
 0x76b   :  { %v1645_v12 = vadd.f32 %v1636_v11, %v4553_v0  ;;  %v1701_v11 = vsub.s32 5, %v4577_v30 }
 0x76c   :  { %v4850_v13 = vadd.f32 %v1650_v58, %v1646_v9  ;;  %v1694_v9 = vrot.slane %v4583_v38, %v1693_v62 }
 0x76d   :  { %v4852_v14 = vadd.f32 %v1650_v58, %v1645_v12 }
 0x76e   :  { %v1656_v16 = vsel %vm66_vm0, %v4850_v13, 0.0 }
 0x76f   :  { %1657 = vadd.xlane.f32.xlu1 %v1656_v16  ;;  %v1653_v17 = vsel %vm66_vm0, %v4852_v14, 0.0  ;;  %v1702_v16 = vrot.slane %v4583_v38, %v1701_v11 }
 0x770   :  { %1654 = vadd.xlane.f32.xlu0 %v1653_v17 }
 0x7fc   :  { %v1658_v18 = vpop.xlane.xlu1 %1657 }
 0x7fd   :  { %v1660_v19 = vmul.f32 0.03125, %v1658_v18  ;;  %v1655_v21 = vpop.xlane.xlu0 %1654 }
 0x7fe   :  { %v1659_v24 = vmul.f32 0.03125, %v1655_v21 }
 0x7ff   :  { %v4859_v1 = vsub.f32 %v4850_v13, %v1660_v19 }
 0x800   :  { %v1661_v0 = vsub.f32 %v4852_v14, %v1659_v24 }
 0x801   :  { %v1664_v28 = vmul.f32 %v4859_v1, %v4859_v1  ;;  %v1696_v19 = vmul.f32 %v1694_v9, %v4859_v1  ;;  %v1711_v1 = vsub.s32 6, %v4577_v30 }
 0x802   :  { %v1663_v25 = vmul.f32 %v1661_v0, %v1661_v0  ;;  %v1695_v12 = vmul.f32 %v1694_v9, %v1661_v0  ;;  %v1802_v0 = vld [vmem:[%s5240_s5 + $0x30] sm:$0xff] }
 0x803   :  { %v1668_v23 = vsel %vm66_vm0, %v1664_v28, 0.0  ;;  %v1803_v28 = vld [vmem:[%s5240_s5 + $0x38] sm:$0xff]  ;;  %v1712_v31 = vrot.slane %v4583_v38, %v1711_v1 }
 0x804   :  { %v1665_v26 = vsel %vm66_vm0, %v1663_v25, 0.0 }
 0x805   :  { %1666 = vadd.xlane.f32.xlu0 %v1665_v26 }
 0x809   :  { %1669 = vadd.xlane.f32.xlu0 %v1668_v23  ;;  %v4243_v23 = vpack.c.bf16 %v1803_v28, %v1802_v0 }
 0x80b   :  { %4244 = vmatprep.subr.bf16.mxu0 %v4243_v23 }
 0x80c   :  { %4246 = vmatpush3.bf16.msra.mxu0 %v4243_v23 }
 0x80d   :  { %4096 = vmatprep.subr.mxu0 %v4473_v53 }
 0x892   :  { %v1667_v52 = vpop.xlane.xlu0 %1666 }
 0x893   :  { %v1671_v54 = vmul.f32 0.032258064, %v1667_v52 }
 0x895   :  { %4341 = vrsqrt.f32 %v1671_v54  ;;  %vm1675_vm9 = vcmp.eq.f32.partialorder %v1671_v54, inf  ;;  %v1678_v5 = vand.u32 2147483648, %v1671_v54  ;;  %vm1677_vm10 = vcmp.eq.f32.partialorder %v1671_v54, 0.0 }
 0x896   :  { %v1670_v56 = vpop.xlane.xlu0 %1669 }
 0x897   :  { %v1672_v63 = vmul.f32 0.032258064, %v1670_v56 }
 0x899   :  { %4343 = vrsqrt.f32 %v1672_v63  ;;  %vm1682_vm11 = vcmp.eq.f32.partialorder %v1672_v63, inf  ;;  %v1685_v57 = vand.u32 2147483648, %v1672_v63  ;;  %vm1684_vm12 = vcmp.eq.f32.partialorder %v1672_v63, 0.0 }
 0x89f   :  { %v4342_v3 = vpop.eup %4341 }
 0x8a0   :  { %v1674_v4 = vmul.f32 %v4342_v3, %v1671_v54 }
 0x8a2   :  { %v1676_v61 = vsel %vm1675_vm9, %v1671_v54, %v1674_v4 }
 0x8a3   :  { %v4344_v2 = vpop.eup %4343  ;;  %v1679_v55 = vsel %vm1677_vm10, %v1678_v5, %v1676_v61 }
 0x8a4   :  { %v1681_v6 = vmul.f32 %v4344_v2, %v1672_v63  ;;  %v1687_v59 = vadd.f32 1e-06, %v1679_v55  ;;  %v3775_v55 = vld [vmem:[%s5237_s2 + $0x20] sm:$0xff] }
 0x8a6   :  { %v1683_v60 = vsel %vm1682_vm11, %v1672_v63, %v1681_v6  ;;  %4345 = vrcp.f32 %v1687_v59  ;;  %v3776_v6 = vld [vmem:[%s5237_s2 + $0x28] sm:$0xff]  ;;  %v3777_v59 = vld [vmem:[%s5237_s2 + $0x30] sm:$0xff] }
 0x8a7   :  { %v1686_v58 = vsel %vm1684_vm12, %v1685_v57, %v1683_v60  ;;  %v4247_v57 = vpack.c.bf16 %v3776_v6, %v3775_v55  ;;  %v3778_v60 = vld [vmem:[%s5237_s2 + $0x38] sm:$0xff] }
 0x8a8   :  { %v1688_v8 = vadd.f32 1e-06, %v1686_v58  ;;  %v4251_v58 = vpack.c.bf16 %v3778_v60, %v3777_v59 }
 0x8a9   :  { %4248 = vmatprep.subr.bf16.mxu1 %v4247_v57 }
 0x8aa   :  { %4347 = vrcp.f32 %v1688_v8 }
 0x8b0   :  { %v4346_v17 = vpop.eup %4345 }
 0x8b1   :  { %v1697_v18 = vmul.f32 %v4346_v17, %v1695_v12 }
 0x8b3   :  { %v1703_v21 = vadd.f32 %v1702_v16, %v1697_v18 }
 0x8b4   :  { %v4348_v24 = vpop.eup %4347 }
 0x8b5   :  { %v1698_v25 = vmul.f32 %v4348_v24, %v1696_v19  ;;  %4053 = vmatprep.mubr.msk.f32.mxu1 %vm66_vm0, %v1703_v21 }
 0x8b7   :  { %v1704_v26 = vadd.f32 %v1702_v16, %v1698_v25 }
 0x8b9   :  { %4054 = vmatmul.mubr.msk.f32.vlgmr.msra.gmra.mrb[20].mxu1 %vm66_vm0, %v1704_v26 }
 0x8ba   :  { %4250 = vmatpush3.bf16.msra.mxu1 %v4247_v57 }
 0x8bb   :  { %4252 = vmatprep.subr.bf16.mxu1 %v4251_v58 }
 0x8be   :  { %4254 = vmatpush3.bf16.msra.mxu1 %v4251_v58 }
 0x8bf   :  { %4086 = vmatprep.subr.mxu1 %v4473_v53 }
 0x98c   :  { %v4055_v32 = vpop.f32.mrb[20].mxu1 }
 0x98d   :  { %v1791_v35 = vadd.f32 %v4055_v32, %v1712_v31  ;;  %v1785_v27 = vpop.f32.mrb[21].mxu1 }
 0x98e   :  { %v1786_v34 = vadd.f32 %v1785_v27, %v1712_v31 }
 0x98f   :  { %v1795_v40 = vmax.f32 %v1791_v35, 0.0  ;;  %v4944_v35 = vld [vmem:[%s5241_s6 + $0x8] sm:$0xff] }
 0x990   :  { %v1794_v37 = vmax.f32 %v1786_v34, 0.0  ;;  %v1937_v27 = vrot.slane %v4944_v35, %v108_v36  ;;  %v1945_v34 = vrot.slane %v4944_v35, %v116_v41  ;;  %v1956_v36 = vrot.slane %v4944_v35, %v126_v51 }
 0x992   :  { %4072 = vmatprep.mubr.msk.f32.mxu0 %vm1804_vm13, %v1794_v37 }
 0x993   :  { %4073 = vmatmul.mubr.msk.f32.vlgmr.msra.gmra.mrb[16].mxu0 %vm1804_vm13, %v1795_v40 }
 0x994   :  { %4098 = vmatprep.mubr.msk.f32.mxu0 %vm4474_vm5, %v4473_v53 }
 0xa66   :  { %v4074_v44 = vpop.f32.mrb[16].mxu0 }
 0xa67   :  { %v1887_v46 = vadd.f32 %v4074_v44, %v4850_v13  ;;  %v1877_v47 = vpop.f32.mrb[17].mxu0 }
 0xa68   :  { %v1886_v48 = vadd.f32 %v1877_v47, %v4852_v14 }
 0xa69   :  { %v4916_v49 = vadd.f32 %v1891_v43, %v1887_v46 }
 0xa6a   :  { %v4918_v50 = vadd.f32 %v1891_v43, %v1886_v48 }
 0xa6b   :  { %v1899_v52 = vsel %vm66_vm0, %v4916_v49, 0.0 }
 0xa6c   :  { %1900 = vadd.xlane.f32.xlu1 %v1899_v52  ;;  %v1896_v54 = vsel %vm66_vm0, %v4918_v50, 0.0 }
 0xa6d   :  { %1897 = vadd.xlane.f32.xlu0 %v1896_v54 }
 0xaf9   :  { %v1901_v56 = vpop.xlane.xlu1 %1900 }
 0xafa   :  { %v1903_v38 = vmul.f32 0.03125, %v1901_v56  ;;  %v1898_v63 = vpop.xlane.xlu0 %1897 }
 0xafb   :  { %v1902_v3 = vmul.f32 0.03125, %v1898_v63 }
 0xafc   :  { %v1905_v13 = vsub.f32 %v4916_v49, %v1903_v38 }
 0xafd   :  { %v1904_v14 = vsub.f32 %v4918_v50, %v1902_v3 }
 0xafe   :  { %v1907_v4 = vmul.f32 %v1905_v13, %v1905_v13  ;;  %v1939_v37 = vmul.f32 %v1937_v27, %v1905_v13 }
 0xaff   :  { %v1906_v5 = vmul.f32 %v1904_v14, %v1904_v14  ;;  %v1938_v43 = vmul.f32 %v1937_v27, %v1904_v14 }
 0xb00   :  { %v1911_v61 = vsel %vm66_vm0, %v1907_v4, 0.0 }
 0xb01   :  { %1912 = vadd.xlane.f32.xlu1 %v1911_v61  ;;  %v1908_v2 = vsel %vm66_vm0, %v1906_v5, 0.0 }
 0xb02   :  { %1909 = vadd.xlane.f32.xlu0 %v1908_v2 }
 0xb8e   :  { %v1913_v8 = vpop.xlane.xlu1 %1912 }
 0xb8f   :  { %v1915_v9 = vmul.f32 0.032258064, %v1913_v8  ;;  %v1910_v12 = vpop.xlane.xlu0 %1909 }
 0xb90   :  { %v1914_v16 = vmul.f32 0.032258064, %v1910_v12 }
 0xb91   :  { %4349 = vrsqrt.f32 %v1915_v9  ;;  %vm1925_vm14 = vcmp.eq.f32.partialorder %v1915_v9, inf  ;;  %v1928_v21 = vand.u32 2147483648, %v1915_v9  ;;  %vm1927_vm15 = vcmp.eq.f32.partialorder %v1915_v9, 0.0 }
 0xb92   :  { %4351 = vrsqrt.f32 %v1914_v16  ;;  %vm1918_vm1 = vcmp.eq.f32.partialorder %v1914_v16, inf  ;;  %v1921_v26 = vand.u32 2147483648, %v1914_v16  ;;  %vm1920_vm2 = vcmp.eq.f32.partialorder %v1914_v16, 0.0 }
 0xb9b   :  { %v4350_v17 = vpop.eup %4349 }
 0xb9c   :  { %v4352_v18 = vpop.eup %4351  ;;  %v1924_v19 = vmul.f32 %v4350_v17, %v1915_v9 }
 0xb9d   :  { %v1917_v24 = vmul.f32 %v4352_v18, %v1914_v16 }
 0xb9e   :  { %v1926_v25 = vsel %vm1925_vm14, %v1915_v9, %v1924_v19 }
 0xb9f   :  { %v1929_v0 = vsel %vm1927_vm15, %v1928_v21, %v1926_v25  ;;  %v1919_v28 = vsel %vm1918_vm1, %v1914_v16, %v1917_v24 }
 0xba0   :  { %v1931_v23 = vadd.f32 1e-06, %v1929_v0  ;;  %v1922_v31 = vsel %vm1920_vm2, %v1921_v26, %v1919_v28 }
 0xba1   :  { %v1930_v32 = vadd.f32 1e-06, %v1922_v31 }
 0xba2   :  { %4353 = vrcp.f32 %v1931_v23 }
 0xba3   :  { %4355 = vrcp.f32 %v1930_v32 }
 0xbac   :  { %v4354_v40 = vpop.eup %4353 }
 0xbad   :  { %v4356_v44 = vpop.eup %4355  ;;  %v1941_v46 = vmul.f32 %v4354_v40, %v1939_v37 }
 0xbae   :  { %v1940_v47 = vmul.f32 %v4356_v44, %v1938_v43 }
 0xbaf   :  { %v1947_v48 = vadd.f32 %v1945_v34, %v1941_v46 }
 0xbb0   :  { %v1946_v52 = vadd.f32 %v1945_v34, %v1940_v47 }
 0xbb2   :  { %4083 = vmatprep.mubr.msk.f32.mxu1 %vm66_vm0, %v1946_v52 }
 0xbb3   :  { %4084 = vmatmul.mubr.msk.f32.vlgmr.msra.gmra.mrb[22].mxu1 %vm66_vm0, %v1947_v48 }
 0xbb4   :  { %4088 = vmatprep.mubr.msk.f32.mxu1 %vm4474_vm5, %v4473_v53 }
 0xc86   :  { %v4085_v41 = vpop.f32.mrb[22].mxu1 }
 0xc87   :  { %v4959_v54 = vadd.f32 %v4085_v41, %v1956_v36  ;;  %v2029_v56 = vpop.f32.mrb[23].mxu1 }
 0xc88   :  { %v4961_v38 = vadd.f32 %v2029_v56, %v1956_v36 }
 0xc89   :  { %2042 = vrot.lane.b32.xlu1 %v4959_v54, %s4475_s14 }
 0xc8a   :  { %2040 = vrot.lane.b32.xlu0 %v4961_v38, %s4475_s14 }
 0xc8d   :  { %2044 = vrot.lane.b32.xlu1 %v4961_v38, %s4476_s15 }
 0xc8e   :  { %2048 = vrot.lane.b32.xlu0 %v4961_v38, %s4477_s16 }
 0xc91   :  { %2046 = vrot.lane.b32.xlu1 %v4959_v54, %s4476_s15 }
 0xc92   :  { %2052 = vrot.lane.b32.xlu0 %v4961_v38, %s4478_s17 }
 0xc95   :  { %2050 = vrot.lane.b32.xlu1 %v4959_v54, %s4477_s16 }
 0xc99   :  { %2128 = vrot.lane.b32.xlu1 %v4959_v54, %s4478_s17 }
 0xcfb   :  { %v4979_v51 = vpop.permute.xlu1 %2042 }
 0xcfc   :  { %2280 = vrot.lane.b32.xlu1 %v4979_v51, %s4478_s17  ;;  %v4983_v63 = vpop.permute.xlu0 %2040 }
 0xcfd   :  { %2204 = vrot.lane.b32.xlu0 %v4983_v63, %s4478_s17 }
 0xcff   :  { %v4987_v3 = vpop.permute.xlu1 %2044 }
 0xd00   :  { %v4989_v13 = vpop.permute.xlu0 %2048 }
 0xd01   :  { %2356 = vrot.lane.b32.xlu0 %v4987_v3, %s4478_s17 }
 0xd03   :  { %v4993_v14 = vpop.permute.xlu1 %2046 }
 0xd04   :  { %2432 = vrot.lane.b32.xlu1 %v4993_v14, %s4478_s17  ;;  %v2053_v4 = vpop.permute.xlu0 %2052 }
 0xd05   :  { %2508 = vrot.lane.b32.xlu0 %v4989_v13, %s4478_s17  ;;  %4087 = vmatpush3.xpose.msk.msra.mxu1 %vm225_vm6, %v2053_v4 }
 0xd06   :  { %4091 = vmatprep.subr.mxu1 %v4473_v53 }
 0xd07   :  { %v5001_v5 = vpop.permute.xlu1 %2050 }
 0xd08   :  { %2584 = vrot.lane.b32.xlu1 %v5001_v5, %s4478_s17  ;;  %4089 = vmatmul.mubr.msk.f32.vlgmr.msra.gmra.mrb[24].mxu1 %vm225_vm6, %v4961_v38 }
 0xd09   :  { %4093 = vmatprep.mubr.msk.f32.mxu1 %vm4474_vm5, %v4473_v53 }
 0xd0b   :  { %v2129_v61 = vpop.permute.xlu1 %2128 }
 0xd0c   :  { %4092 = vmatpush3.xpose.msk.msra.mxu1 %vm225_vm6, %v2129_v61 }
 0xd0d   :  { %4101 = vmatprep.subr.mxu1 %v4473_v53 }
 0xd0f   :  { %4094 = vmatmul.mubr.msk.f32.vlgmr.msra.gmra.mrb[26].mxu1 %vm225_vm6, %v4959_v54 }
 0xd10   :  { %4103 = vmatprep.mubr.msk.f32.mxu1 %vm4474_vm5, %v4473_v53 }
 0xd6e   :  { %v2281_v2 = vpop.permute.xlu1 %2280 }
 0xd6f   :  { %4102 = vmatpush3.xpose.msk.msra.mxu1 %vm225_vm6, %v2281_v2  ;;  %v2205_v55 = vpop.permute.xlu0 %2204 }
 0xd70   :  { %4097 = vmatpush3.xpose.msk.msra.mxu0 %vm225_vm6, %v2205_v55  ;;  %4111 = vmatprep.subr.mxu1 %v4473_v53 }
 0xd71   :  { %4106 = vmatprep.subr.mxu0 %v4473_v53 }
 0xd72   :  { %4104 = vmatmul.mubr.msk.f32.vlgmr.msra.gmra.mrb[28].mxu1 %vm225_vm6, %v4979_v51 }
 0xd73   :  { %4099 = vmatmul.mubr.msk.f32.vlgmr.msra.gmra.mrb[18].mxu0 %vm225_vm6, %v4983_v63  ;;  %v2357_v6 = vpop.permute.xlu0 %2356  ;;  %4113 = vmatprep.mubr.msk.f32.mxu1 %vm4474_vm5, %v4473_v53 }
 0xd74   :  { %4107 = vmatpush3.xpose.msk.msra.mxu0 %vm225_vm6, %v2357_v6  ;;  %4108 = vmatprep.mubr.msk.f32.mxu0 %vm4474_vm5, %v4473_v53 }
 0xd75   :  { %4116 = vmatprep.subr.mxu0 %v4473_v53 }
 0xd76   :  { %v2433_v59 = vpop.permute.xlu1 %2432 }
 0xd77   :  { %4109 = vmatmul.mubr.msk.f32.vlgmr.msra.gmra.mrb[20].mxu0 %vm225_vm6, %v4987_v3  ;;  %4112 = vmatpush3.xpose.msk.msra.mxu1 %vm225_vm6, %v2433_v59  ;;  %v2509_v57 = vpop.permute.xlu0 %2508 }
 0xd78   :  { %4117 = vmatpush3.xpose.msk.msra.mxu0 %vm225_vm6, %v2509_v57  ;;  %4118 = vmatprep.mubr.msk.f32.mxu0 %vm4474_vm5, %v4473_v53 }
 0xd79   :  { %4121 = vmatprep.subr.mxu1 %v4473_v53  ;;  %4126 = vmatprep.subr.mxu0 %v4473_v53 }
 0xd7a   :  { %v2585_v60 = vpop.permute.xlu1 %2584  ;;  %4114 = vmatmul.mubr.msk.f32.vlgmr.msra.gmra.mrb[30].mxu1 %vm225_vm6, %v4993_v14 }
 0xd7b   :  { %4119 = vmatmul.mubr.msk.f32.vlgmr.msra.gmra.mrb[22].mxu0 %vm225_vm6, %v4989_v13  ;;  %4122 = vmatpush3.xpose.msk.msra.mxu1 %vm225_vm6, %v2585_v60 }
 0xd7c   :  { %4123 = vmatprep.mubr.msk.f32.mxu1 %vm4474_vm5, %v4473_v53  ;;  %4131 = vmatprep.subr.mxu1 %v4473_v53 }
 0xd7d   :  { %4128 = vmatprep.mubr.msk.f32.mxu0 %vm4474_vm5, %v4473_v53 }
 0xd7e   :  { %4124 = vmatmul.mubr.msk.f32.vlgmr.msra.gmra.mrb[32].mxu1 %vm225_vm6, %v5001_v5 }
 0xd7f   :  { %4133 = vmatprep.mubr.msk.f32.mxu1 %vm4474_vm5, %v4473_v53 }
 0xddb   :  { %v2124_v58 = vpop.f32.mrb[24].mxu1 }
 0xddc   :  { %v2125_v8 = vadd.f32 %v2124_v58, %v4699_v10  ;;  %v4090_v9 = vpop.f32.mrb[25].mxu1 }
 0xdde   :  { %v2660_v12 = vsel %vm225_vm6, %v2125_v8, -inf }
 0xddf   :  { %2661 = vmax.xlane.f32.xlu0 %v2660_v12 }
 0xde2   :  { %v2200_v16 = vpop.f32.mrb[26].mxu1 }
 0xde3   :  { %v2201_v17 = vadd.f32 %v2200_v16, %v4706_v15  ;;  %v4095_v18 = vpop.f32.mrb[27].mxu1 }
 0xde5   :  { %v2663_v19 = vsel %vm225_vm6, %v2201_v17, -inf }
 0xde6   :  { %2664 = vmax.xlane.f32.xlu1 %v2663_v19 }
 0xe45   :  { %v2352_v21 = vpop.f32.mrb[28].mxu1 }
 0xe46   :  { %v2353_v24 = vadd.f32 %v2352_v21, %v4713_v20  ;;  %v2276_v25 = vpop.f32.mrb[18].mxu0  ;;  %v4105_v26 = vpop.f32.mrb[29].mxu1 }
 0xe47   :  { %v4100_v0 = vpop.f32.mrb[19].mxu0  ;;  %v2277_v28 = vadd.f32 %v2276_v25, %v4718_v22 }
 0xe48   :  { %v2669_v10 = vsel %vm225_vm6, %v2353_v24, -inf }
 0xe49   :  { %2670 = vmax.xlane.f32.xlu0 %v2669_v10  ;;  %v2666_v15 = vsel %vm225_vm6, %v2277_v28, -inf }
 0xe4a   :  { %v2428_v23 = vpop.f32.mrb[20].mxu0 }
 0xe4b   :  { %v4110_v31 = vpop.f32.mrb[21].mxu0  ;;  %v2429_v32 = vadd.f32 %v2428_v23, %v4726_v29 }
 0xe4d   :  { %v2504_v27 = vpop.f32.mrb[30].mxu1  ;;  %2667 = vmax.xlane.f32.xlu0 %v2666_v15  ;;  %v2672_v44 = vsel %vm225_vm6, %v2429_v32, -inf }
 0xe4e   :  { %v2505_v34 = vadd.f32 %v2504_v27, %v4731_v33  ;;  %v4115_v37 = vpop.f32.mrb[31].mxu1  ;;  %v2580_v20 = vpop.f32.mrb[22].mxu0 }
 0xe4f   :  { %v4120_v40 = vpop.f32.mrb[23].mxu0  ;;  %v2581_v43 = vadd.f32 %v2580_v20, %v4738_v39 }
 0xe50   :  { %v2675_v22 = vsel %vm225_vm6, %v2505_v34, -inf }
 0xe51   :  { %2676 = vmax.xlane.f32.xlu1 %v2675_v22  ;;  %v2656_v46 = vpop.f32.mrb[32].mxu1  ;;  %2673 = vmax.xlane.f32.xlu0 %v2672_v44  ;;  %v2678_v52 = vsel %vm225_vm6, %v2581_v43, -inf }
 0xe52   :  { %v2657_v29 = vadd.f32 %v2656_v46, %v4744_v45  ;;  %v4125_v47 = vpop.f32.mrb[33].mxu1 }
 0xe54   :  { %v2681_v48 = vsel %vm225_vm6, %v2657_v29, -inf }
 0xe55   :  { %2682 = vmax.xlane.f32.xlu1 %v2681_v48  ;;  %2679 = vmax.xlane.f32.xlu0 %v2678_v52 }
 0xe66   :  { %2824 = vrot.lane.b32.xlu1 %v4959_v54, %s4479_s1 }
 0xe6a   :  { %2900 = vrot.lane.b32.xlu1 %v4983_v63, %s4479_s1 }
 0xe6b   :  { %2748 = vrot.lane.b32.xlu0 %v4961_v38, %s4479_s1 }
 0xe6c   :  { %v2662_v33 = vpop.xlane.xlu0 %2661 }
 0xe6d   :  { %v2684_v39 = vsub.f32 %v2125_v8, %v2662_v33 }
 0xe6e   :  { %2976 = vrot.lane.b32.xlu1 %v4979_v51, %s4479_s1 }
 0xe6f   :  { %3052 = vrot.lane.b32.xlu0 %v4987_v3, %s4479_s1  ;;  %v2692_v45 = vmul.f32 1.442695, %v2684_v39 }
 0xe71   :  { %4357 = vpow2.f32 %v2692_v45 }
 0xe72   :  { %3128 = vrot.lane.b32.xlu1 %v4993_v14, %s4479_s1 }
 0xe73   :  { %v2665_v36 = vpop.xlane.xlu1 %2664 }
 0xe74   :  { %v2685_v41 = vsub.f32 %v2201_v17, %v2665_v36 }
 0xe76   :  { %v2694_v54 = vmul.f32 1.442695, %v2685_v41 }
 0xe78   :  { %4359 = vpow2.f32 %v2694_v54 }
 0xe7b   :  { %v5079_v56 = vpop.eup %4357 }
 0xe7c   :  { %v2708_v38 = vsel %vm225_vm6, %v5079_v56, 0.0 }
 0xe82   :  { %v5083_v51 = vpop.eup %4359 }
 0xe83   :  { %v2711_v63 = vsel %vm225_vm6, %v5083_v51, 0.0 }
 0xe8e   :  { %2709 = vadd.xlane.f32.xlu0 %v2708_v38 }
 0xe96   :  { %2712 = vadd.xlane.f32.xlu1 %v2711_v63 }
 0xed6   :  { %v2671_v3 = vpop.xlane.xlu0 %2670 }
 0xed7   :  { %v2687_v14 = vsub.f32 %v2353_v24, %v2671_v3 }
 0xed9   :  { %v2698_v4 = vmul.f32 1.442695, %v2687_v14 }
 0xeda   :  { %v2668_v61 = vpop.xlane.xlu0 %2667 }
 0xedb   :  { %4361 = vpow2.f32 %v2698_v4  ;;  %v2686_v2 = vsub.f32 %v2277_v28, %v2668_v61 }
 0xedd   :  { %v2696_v55 = vmul.f32 1.442695, %v2686_v2 }
 0xede   :  { %v2677_v6 = vpop.xlane.xlu1 %2676  ;;  %v2674_v59 = vpop.xlane.xlu0 %2673 }
 0xedf   :  { %4363 = vpow2.f32 %v2696_v55  ;;  %v2689_v57 = vsub.f32 %v2505_v34, %v2677_v6  ;;  %v2688_v60 = vsub.f32 %v2429_v32, %v2674_v59 }
 0xee1   :  { %v2702_v58 = vmul.f32 1.442695, %v2689_v57  ;;  %v2700_v8 = vmul.f32 1.442695, %v2688_v60 }
 0xee2   :  { %v2683_v9 = vpop.xlane.xlu1 %2682  ;;  %v2680_v12 = vpop.xlane.xlu0 %2679 }
 0xee3   :  { %4365 = vpow2.f32 %v2702_v58  ;;  %v2691_v16 = vsub.f32 %v2657_v29, %v2683_v9  ;;  %v2690_v17 = vsub.f32 %v2581_v43, %v2680_v12  ;;  %v3805_v9 = vld [vmem:[%s5238_s3 + $0x20] sm:$0xff]  ;;  %v3806_v12 = vld [vmem:[%s5238_s3 + $0x28] sm:$0xff] }
 0xee4   :  { %4367 = vpow2.f32 %v2700_v8 }
 0xee5   :  { %v4362_v18 = vpop.eup %4361  ;;  %v2706_v19 = vmul.f32 1.442695, %v2691_v16  ;;  %v2704_v21 = vmul.f32 1.442695, %v2690_v17  ;;  %v4255_v16 = vpack.c.bf16 %v3806_v12, %v3805_v9  ;;  %v3808_v17 = vld [vmem:[%s5238_s3 + $0x38] sm:$0xff] }
 0xee6   :  { %v2825_v24 = vpop.permute.xlu1 %2824  ;;  %v2749_v25 = vpop.permute.xlu0 %2748  ;;  %v2717_v26 = vsel %vm225_vm6, %v4362_v18, 0.0  ;;  %v3816_v12 = vld [vmem:[%s5240_s5 + $0x58] sm:$0xff] }
 0xee7   :  { %4369 = vpow2.f32 %v2706_v19  ;;  %4132 = vmatpush3.msra.mxu1 %v2825_v24  ;;  %2718 = vadd.xlane.f32.xlu1 %v2717_v26 }
 0xee8   :  { %4371 = vpow2.f32 %v2704_v21  ;;  %4127 = vmatpush3.msra.mxu0 %v2749_v25  ;;  %4141 = vmatprep.subr.mxu1 %v4473_v53 }
 0xee9   :  { %v4364_v0 = vpop.eup %4363  ;;  %4136 = vmatprep.subr.mxu0 %v4473_v53 }
 0xeea   :  { %v2714_v28 = vsel %vm225_vm6, %v4364_v0, 0.0  ;;  %v2901_v20 = vpop.permute.xlu1 %2900  ;;  %v3053_v40 = vpop.permute.xlu0 %3052 }
 0xeeb   :  { %2715 = vadd.xlane.f32.xlu0 %v2714_v28 }
 0xeed   :  { %v4366_v10 = vpop.eup %4365 }
 0xeee   :  { %v4368_v23 = vpop.eup %4367  ;;  %v2723_v31 = vsel %vm225_vm6, %v4366_v10, 0.0  ;;  %v2977_v43 = vpop.permute.xlu1 %2976 }
 0xeef   :  { %2724 = vadd.xlane.f32.xlu1 %v2723_v31  ;;  %v2720_v32 = vsel %vm225_vm6, %v4368_v23, 0.0 }
 0xef0   :  { %2721 = vadd.xlane.f32.xlu0 %v2720_v32 }
 0xef1   :  { %v5093_v15 = vpop.eup %4369 }
 0xef2   :  { %v5095_v27 = vpop.eup %4371  ;;  %v2729_v34 = vsel %vm225_vm6, %v5093_v15, 0.0  ;;  %v3129_v44 = vpop.permute.xlu1 %3128 }
 0xef3   :  { %2730 = vadd.xlane.f32.xlu1 %v2729_v34  ;;  %v2726_v37 = vsel %vm225_vm6, %v5095_v27, 0.0 }
 0xef4   :  { %2727 = vadd.xlane.f32.xlu0 %v2726_v37 }
 0xf04   :  { %3280 = vrot.lane.b32.xlu1 %v5001_v5, %s4479_s1 }
 0xf0a   :  { %3204 = vrot.lane.b32.xlu0 %v4989_v13, %s4479_s1 }
 0xf1b   :  { %v2710_v22 = vpop.xlane.xlu0 %2709 }
 0xf1c   :  { %4373 = vrcp.f32 %v2710_v22 }
 0xf23   :  { %v2713_v46 = vpop.xlane.xlu1 %2712 }
 0xf24   :  { %4375 = vrcp.f32 %v2713_v46 }
 0xf26   :  { %v4374_v29 = vpop.eup %4373 }
 0xf27   :  { %v2740_v47 = vmul.f32 %v4374_v29, %v5079_v56 }
 0xf29   :  { %4129 = vmatmul.mubr.msk.f32.vlgmr.msra.gmra.mrb[24].mxu0 %vm225_vm6, %v2740_v47 }
 0xf2a   :  { %4137 = vmatpush3.msra.mxu0 %v2901_v20  ;;  %4138 = vmatprep.mubr.msk.f32.mxu0 %vm4474_vm5, %v4473_v53 }
 0xf2b   :  { %4146 = vmatprep.subr.mxu0 %v4473_v53 }
 0xf2e   :  { %v4376_v13 = vpop.eup %4375 }
 0xf2f   :  { %v2741_v5 = vmul.f32 %v4376_v13, %v5083_v51 }
 0xf31   :  { %4134 = vmatmul.mubr.msk.f32.vlgmr.msra.gmra.mrb[34].mxu1 %vm225_vm6, %v2741_v5  ;;  %v3477_v5 = vrot.slane %v4944_v35, %v1649_v7 }
 0xf32   :  { %4142 = vmatpush3.msra.mxu1 %v2977_v43  ;;  %4143 = vmatprep.mubr.msk.f32.mxu1 %vm4474_vm5, %v4473_v53 }
 0xf33   :  { %4151 = vmatprep.subr.mxu1 %v4473_v53 }
 0xf74   :  { %v2719_v48 = vpop.xlane.xlu1 %2718 }
 0xf75   :  { %4377 = vrcp.f32 %v2719_v48 }
 0xf78   :  { %v2716_v52 = vpop.xlane.xlu0 %2715 }
 0xf79   :  { %4379 = vrcp.f32 %v2716_v52 }
 0xf7c   :  { %v2725_v33 = vpop.xlane.xlu1 %2724 }
 0xf7d   :  { %4381 = vrcp.f32 %v2725_v33  ;;  %v2722_v39 = vpop.xlane.xlu0 %2721 }
 0xf7e   :  { %4383 = vrcp.f32 %v2722_v39 }
 0xf7f   :  { %v4378_v45 = vpop.eup %4377 }
 0xf80   :  { %v2743_v36 = vmul.f32 %v4378_v45, %v4362_v18  ;;  %v2731_v41 = vpop.xlane.xlu1 %2730 }
 0xf81   :  { %4385 = vrcp.f32 %v2731_v41  ;;  %v2728_v54 = vpop.xlane.xlu0 %2727 }
 0xf82   :  { %4387 = vrcp.f32 %v2728_v54  ;;  %4144 = vmatmul.mubr.msk.f32.vlgmr.msra.gmra.mrb[36].mxu1 %vm225_vm6, %v2743_v36 }
 0xf83   :  { %v4380_v56 = vpop.eup %4379  ;;  %4152 = vmatpush3.msra.mxu1 %v3129_v44  ;;  %4153 = vmatprep.mubr.msk.f32.mxu1 %vm4474_vm5, %v4473_v53 }
 0xf84   :  { %v2742_v38 = vmul.f32 %v4380_v56, %v4364_v0  ;;  %4161 = vmatprep.subr.mxu1 %v4473_v53  ;;  %v3281_v4 = vpop.permute.xlu1 %3280 }
 0xf85   :  { %v3205_v2 = vpop.permute.xlu0 %3204 }
 0xf86   :  { %4139 = vmatmul.mubr.msk.f32.vlgmr.msra.gmra.mrb[26].mxu0 %vm225_vm6, %v2742_v38 }
 0xf87   :  { %v4382_v51 = vpop.eup %4381  ;;  %4147 = vmatpush3.msra.mxu0 %v3053_v40  ;;  %4148 = vmatprep.mubr.msk.f32.mxu0 %vm4474_vm5, %v4473_v53 }
 0xf88   :  { %v4384_v63 = vpop.eup %4383  ;;  %v2745_v3 = vmul.f32 %v4382_v51, %v4366_v10  ;;  %4156 = vmatprep.subr.mxu0 %v4473_v53 }
 0xf89   :  { %v2744_v14 = vmul.f32 %v4384_v63, %v4368_v23 }
 0xf8a   :  { %4154 = vmatmul.mubr.msk.f32.vlgmr.msra.gmra.mrb[38].mxu1 %vm225_vm6, %v2745_v3 }
 0xf8b   :  { %v4386_v61 = vpop.eup %4385  ;;  %4149 = vmatmul.mubr.msk.f32.vlgmr.msra.gmra.mrb[28].mxu0 %vm225_vm6, %v2744_v14  ;;  %4162 = vmatpush3.msra.mxu1 %v3281_v4 }
 0xf8c   :  { %v4388_v55 = vpop.eup %4387  ;;  %v2747_v6 = vmul.f32 %v4386_v61, %v5093_v15  ;;  %4157 = vmatpush3.msra.mxu0 %v3205_v2  ;;  %4158 = vmatprep.mubr.msk.f32.mxu0 %vm4474_vm5, %v4473_v53  ;;  %v3533_v61 = vld [vmem:[#allocation5 + $0x20] sm:$0xff]  ;;  %v3534_v2 = vld [vmem:[#allocation5 + $0x28] sm:$0xff] }
 0xf8d   :  { %v2746_v59 = vmul.f32 %v4388_v55, %v5095_v27  ;;  %4163 = vmatprep.mubr.msk.f32.mxu1 %vm4474_vm5, %v4473_v53  ;;  %4256 = vmatprep.subr.bf16.mxu0 %v4255_v16  ;;  %v3807_v53 = vld [vmem:[%s5238_s3 + $0x30] sm:$0xff]  ;;  %v3535_v55 = vld [vmem:[#allocation5 + $0x30] sm:$0xff] }
 0xf8e   :  { %4164 = vmatmul.mubr.msk.f32.vlgmr.msra.gmra.mrb[40].mxu1 %vm225_vm6, %v2747_v6  ;;  %v4259_v18 = vpack.c.bf16 %v3808_v17, %v3807_v53  ;;  %v4263_v6 = vpack.c.bf16 %v3534_v2, %v3533_v61  ;;  %v3817_v53 = vld [vmem:[%s5240_s5 + $0x60] sm:$0xff]  ;;  %v3818_v17 = vld [vmem:[%s5240_s5 + $0x68] sm:$0xff] }
 0xf8f   :  { %4159 = vmatmul.mubr.msk.f32.vlgmr.msra.gmra.mrb[30].mxu0 %vm225_vm6, %v2746_v59  ;;  %v3536_v59 = vld [vmem:[#allocation5 + $0x38] sm:$0xff] }
 0xf90   :  { %4258 = vmatpush3.bf16.msra.mxu0 %v4255_v16  ;;  %4264 = vmatprep.subr.bf16.mxu1 %v4263_v6 }
 0xf91   :  { %4260 = vmatprep.subr.bf16.mxu0 %v4259_v18  ;;  %4266 = vmatpush3.bf16.msra.mxu1 %v4263_v6 }
 0xf94   :  { %4262 = vmatpush3.bf16.msra.mxu0 %v4259_v18  ;;  %v4279_v18 = vpack.c.bf16 %v3818_v17, %v3817_v53 }
 0xffc   :  { %v2820_v57 = vpop.f32.mrb[24].mxu0 }
 0xffd   :  { %v4130_v60 = vpop.f32.mrb[25].mxu0 }
 0xffe   :  { %v3813_v60 = vld [vmem:[%s5240_s5 + $0x40] sm:$0xff] }
0x1004   :  { %v2896_v58 = vpop.f32.mrb[34].mxu1 }
0x1005   :  { %v4135_v8 = vpop.f32.mrb[35].mxu1 }
0x1006   :  { %v3815_v8 = vld [vmem:[%s5240_s5 + $0x50] sm:$0xff] }
0x1007   :  { %v4275_v16 = vpack.c.bf16 %v3816_v12, %v3815_v8 }
0x1055   :  { %v3048_v19 = vpop.f32.mrb[36].mxu1 }
0x1056   :  { %3360 = vrot.lane.b32.xlu1 %v3048_v19, %s4471_s12  ;;  %v4145_v21 = vpop.f32.mrb[37].mxu1 }
0x1059   :  { %v2972_v24 = vpop.f32.mrb[26].mxu0 }
0x105a   :  { %3358 = vrot.lane.b32.xlu0 %v2972_v24, %s4471_s12  ;;  %v4140_v25 = vpop.f32.mrb[27].mxu0 }
0x105d   :  { %v3200_v26 = vpop.f32.mrb[38].mxu1 }
0x105e   :  { %v3124_v0 = vpop.f32.mrb[28].mxu0  ;;  %3368 = vrot.lane.b32.xlu1 %v3200_v26, %s4480_s23  ;;  %v4155_v28 = vpop.f32.mrb[39].mxu1 }
0x105f   :  { %3366 = vrot.lane.b32.xlu0 %v3124_v0, %s4480_s23  ;;  %v4150_v10 = vpop.f32.mrb[29].mxu0 }
0x1061   :  { %v3352_v23 = vpop.f32.mrb[40].mxu1 }
0x1062   :  { %v3276_v31 = vpop.f32.mrb[30].mxu0  ;;  %3376 = vrot.lane.b32.xlu1 %v3352_v23, %s4481_s24  ;;  %v4165_v32 = vpop.f32.mrb[41].mxu1 }
0x1063   :  { %3374 = vrot.lane.b32.xlu0 %v3276_v31, %s4481_s24  ;;  %v4160_v15 = vpop.f32.mrb[31].mxu0 }
0x10c8   :  { %v3361_v27 = vpop.permute.xlu1 %3360 }
0x10c9   :  { %v3381_v40 = vsel %vm225_vm6, %v2896_v58, %v3361_v27  ;;  %v3814_v58 = vld [vmem:[%s5240_s5 + $0x48] sm:$0xff] }
0x10ca   :  { %v4271_v9 = vpack.c.bf16 %v3814_v58, %v3813_v60 }
0x10cc   :  { %v3359_v34 = vpop.permute.xlu0 %3358  ;;  %4272 = vmatprep.subr.bf16.mxu0 %v4271_v9 }
0x10cd   :  { %v3380_v43 = vsel %vm225_vm6, %v2820_v57, %v3359_v34  ;;  %v4267_v57 = vpack.c.bf16 %v3536_v59, %v3535_v55 }
0x10cf   :  { %4268 = vmatprep.subr.bf16.mxu1 %v4267_v57 }
0x10d0   :  { %v3369_v37 = vpop.permute.xlu1 %3368  ;;  %4270 = vmatpush3.bf16.msra.mxu1 %v4267_v57 }
0x10d1   :  { %v3367_v20 = vpop.permute.xlu0 %3366  ;;  %v3383_v22 = vsel %vm1554_vm7, %v3381_v40, %v3369_v37  ;;  %v3521_v40 = vrot.slane %v4944_v35, %v1693_v62  ;;  %v3819_v62 = vld [vmem:[%s5240_s5 + $0x70] sm:$0xff] }
0x10d2   :  { %v3382_v46 = vsel %vm1554_vm7, %v3380_v43, %v3367_v20 }
0x10d4   :  { %v3377_v44 = vpop.permute.xlu1 %3376 }
0x10d5   :  { %v3385_v29 = vsel %vm1557_vm8, %v3383_v22, %v3377_v44  ;;  %v3375_v47 = vpop.permute.xlu0 %3374  ;;  %v3529_v22 = vrot.slane %v4944_v35, %v1701_v11 }
0x10d6   :  { %v3384_v13 = vsel %vm1557_vm8, %v3382_v46, %v3375_v47 }
0x10d7   :  { %4174 = vmatprep.mubr.msk.f32.mxu0 %vm66_vm0, %v3384_v13 }
0x10d8   :  { %4175 = vmatmul.mubr.msk.f32.vlgmr.msra.gmra.mrb[32].mxu0 %vm66_vm0, %v3385_v29 }
0x10d9   :  { %4274 = vmatpush3.bf16.msra.mxu0 %v4271_v9 }
0x10da   :  { %4276 = vmatprep.subr.bf16.mxu0 %v4275_v16 }
0x10dd   :  { %4278 = vmatpush3.bf16.msra.mxu0 %v4275_v16 }
0x10de   :  { %4280 = vmatprep.subr.bf16.mxu0 %v4279_v18 }
0x10e1   :  { %4282 = vmatpush3.bf16.msra.mxu0 %v4279_v18 }
0x11ab   :  { %v4176_v48 = vpop.f32.mrb[32].mxu0 }
0x11ac   :  { %v3473_v52 = vadd.f32 %v4176_v48, %v4916_v49  ;;  %v3463_v33 = vpop.f32.mrb[33].mxu0 }
0x11ad   :  { %v3472_v39 = vadd.f32 %v3463_v33, %v4918_v50  ;;  %v3540_v33 = vrot.slane %v4944_v35, %v1711_v1 }
0x11ae   :  { %v5164_v45 = vadd.f32 %v3477_v5, %v3473_v52  ;;  %v3820_v52 = vld [vmem:[%s5240_s5 + $0x78] sm:$0xff]  ;;  %s4482_s5 = smov [#allocation7]  }
0x11af   :  { %v5166_v36 = vadd.f32 %v3477_v5, %v3472_v39  ;;  %v4283_v11 = vpack.c.bf16 %v3820_v52, %v3819_v62  ;;  %s3729_s29 = sshll.u32 %s4482_s5, 4  ;;  %s3730_s29 = int_to_ptr.vmem [resolvable:$true] %s3729_s29 }
0x11b0   :  { %v3483_v41 = vsel %vm66_vm0, %v5164_v45, 0.0  ;;  %s4441_s2 = scalar_lea.vmem %s3730_s29, 256  ;;  %p4446_p3 = scmp.lt.s32.totalorder %s3730_s29, %s3730_s29 }
0x11b1   :  { %3484 = vadd.xlane.f32.xlu1 %v3483_v41  ;;  %v3480_v54 = vsel %vm66_vm0, %v5166_v36, 0.0  ;;  %4284 = vmatprep.subr.bf16.mxu0 %v4283_v11  ;;  %p4442_p2 = scmp.ne.s32.totalorder %s3730_s29, %s4441_s2  ;;  %p4447_p4 = scmp.lt.s32.totalorder %s4441_s2, %s4441_s2 }
0x11b2   :  { %3481 = vadd.xlane.f32.xlu0 %v3480_v54  ;;  %4286 = vmatpush3.bf16.msra.mxu0 %v4283_v11 }
0x11b3   :  { %p4448_p5 = por %p4447_p4, %p4446_p3 }
0x11b5   :  { %p4449_p6 = pnand %p4448_p5, %p4442_p2 }
0x123e   :  { %v3485_v56 = vpop.xlane.xlu1 %3484 }
0x123f   :  { %v3487_v7 = vmul.f32 0.03125, %v3485_v56  ;;  %v3482_v38 = vpop.xlane.xlu0 %3481 }
0x1240   :  { %v3486_v51 = vmul.f32 0.03125, %v3482_v38 }
0x1241   :  { %v3489_v49 = vsub.f32 %v5164_v45, %v3487_v7 }
0x1242   :  { %v3488_v50 = vsub.f32 %v5166_v36, %v3486_v51  ;;  %v3719_v51 = vrot.slane %v4944_v35, %v1890_v42 }
0x1243   :  { %v3491_v14 = vmul.f32 %v3489_v49, %v3489_v49  ;;  %v3523_v29 = vmul.f32 %v3521_v40, %v3489_v49 }
0x1244   :  { %v3490_v63 = vmul.f32 %v3488_v50, %v3488_v50  ;;  %v3522_v43 = vmul.f32 %v3521_v40, %v3488_v50 }
0x1245   :  { %v3495_v4 = vsel %vm66_vm0, %v3491_v14, 0.0 }
0x1246   :  { %v3492_v3 = vsel %vm66_vm0, %v3490_v63, 0.0 }
0x1247   :  { %3493 = vadd.xlane.f32.xlu0 %v3492_v3 }
0x124b   :  { %3496 = vadd.xlane.f32.xlu0 %v3495_v4 }
0x12d4   :  { %v3494_v19 = vpop.xlane.xlu0 %3493 }
0x12d5   :  { %v3498_v21 = vmul.f32 0.032258064, %v3494_v19 }
0x12d7   :  { %4389 = vrsqrt.f32 %v3498_v21  ;;  %vm3502_vm3 = vcmp.eq.f32.partialorder %v3498_v21, inf  ;;  %v3505_v28 = vand.u32 2147483648, %v3498_v21  ;;  %vm3504_vm4 = vcmp.eq.f32.partialorder %v3498_v21, 0.0 }
0x12d8   :  { %v3497_v24 = vpop.xlane.xlu0 %3496 }
0x12d9   :  { %v3499_v25 = vmul.f32 0.032258064, %v3497_v24 }
0x12db   :  { %4391 = vrsqrt.f32 %v3499_v25  ;;  %vm3509_vm5 = vcmp.eq.f32.partialorder %v3499_v25, inf  ;;  %v3512_v27 = vand.u32 2147483648, %v3499_v25  ;;  %vm3511_vm6 = vcmp.eq.f32.partialorder %v3499_v25, 0.0 }
0x12e1   :  { %v4390_v26 = vpop.eup %4389 }
0x12e2   :  { %v3501_v0 = vmul.f32 %v4390_v26, %v3498_v21 }
0x12e4   :  { %v3503_v10 = vsel %vm3502_vm3, %v3498_v21, %v3501_v0 }
0x12e5   :  { %v4392_v23 = vpop.eup %4391  ;;  %v3506_v31 = vsel %vm3504_vm4, %v3505_v28, %v3503_v10 }
0x12e6   :  { %v3508_v32 = vmul.f32 %v4392_v23, %v3499_v25  ;;  %v3514_v15 = vadd.f32 1e-06, %v3506_v31 }
0x12e8   :  { %v3510_v34 = vsel %vm3509_vm5, %v3499_v25, %v3508_v32  ;;  %4393 = vrcp.f32 %v3514_v15 }
0x12e9   :  { %v3513_v37 = vsel %vm3511_vm6, %v3512_v27, %v3510_v34 }
0x12ea   :  { %v3515_v20 = vadd.f32 1e-06, %v3513_v37 }
0x12ec   :  { %4395 = vrcp.f32 %v3515_v20 }
0x12f2   :  { %v4394_v44 = vpop.eup %4393 }
0x12f3   :  { %v3524_v46 = vmul.f32 %v4394_v44, %v3522_v43 }
0x12f5   :  { %v3530_v47 = vadd.f32 %v3529_v22, %v3524_v46 }
0x12f6   :  { %v4396_v13 = vpop.eup %4395 }
0x12f7   :  { %v3525_v5 = vmul.f32 %v4396_v13, %v3523_v29  ;;  %4185 = vmatprep.mubr.msk.f32.mxu1 %vm66_vm0, %v3530_v47 }
0x12f9   :  { %v3531_v48 = vadd.f32 %v3529_v22, %v3525_v5 }
0x12fb   :  { %4186 = vmatmul.mubr.msk.f32.vlgmr.msra.gmra.mrb[42].mxu1 %vm66_vm0, %v3531_v48 }
0x13ce   :  { %v4187_v39 = vpop.f32.mrb[42].mxu1 }
0x13cf   :  { %v3619_v41 = vadd.f32 %v4187_v39, %v3540_v33  ;;  %v3613_v54 = vpop.f32.mrb[43].mxu1 }
0x13d0   :  { %v3614_v56 = vadd.f32 %v3613_v54, %v3540_v33 }
0x13d1   :  { %v3623_v38 = vmax.f32 %v3619_v41, 0.0 }
0x13d2   :  { %v3622_v7 = vmax.f32 %v3614_v56, 0.0 }
0x13d4   :  { %4204 = vmatprep.mubr.msk.f32.mxu0 %vm1804_vm13, %v3622_v7 }
0x13d5   :  { %4205 = vmatmul.mubr.msk.f32.vlgmr.msra.gmra.mrb[34].mxu0 %vm1804_vm13, %v3623_v38 }
0x14a8   :  { %v4206_v49 = vpop.f32.mrb[34].mxu0 }
0x14a9   :  { %v3715_v50 = vadd.f32 %v4206_v49, %v5164_v45  ;;  %v3705_v63 = vpop.f32.mrb[35].mxu0 }
0x14aa   :  { %v3714_v1 = vadd.f32 %v3705_v63, %v5166_v36 }
0x14ab   :  { %v3721_v3 = vadd.f32 %v3719_v51, %v3715_v50 }
0x14ac   :  { %v3720_v14 = vadd.f32 %v3719_v51, %v3714_v1 }
0x14ad   :  { %3723 = vst.msk [vmem:[#allocation7 + $0x8] sm:$0xff] %vm66_vm0, %v3721_v3 }
0x14ae   :  { %3722 = vst.msk [vmem:[#allocation7] sm:$0xff] %vm66_vm0, %v3720_v14 }
0x14af   :  { %4452 = shalt.err (!%p4449_p6)
}
0x14b0   :  { %s4453_s14 = scalar_lea.hbm %s5242_s7, 256 }
0x14b1   :  { %p4454_p7 = scmp.ne.s32.totalorder %s5242_s7, %s4453_s14  ;;  %p4457_p8 = scmp.lt.u32.totalorder %s4453_s14, %s5242_s7 }
0x14b3   :  { %p4459_p9 = pnand %p4457_p8, %p4454_p7 }
0x14b5   :  { %4462 = shalt.err (!%p4459_p9)
}
0x14b6   :  { %3735 = dma.vmem_to_hbm [thread:$0]  %s3730_s29, 256, %s5242_s7, [#allocation4], %s4470_s11, %s4470_s11, %s4471_s12  }
0x14b7   :  { %4467 = dma.done.wait [#allocation4], 256  }
0x14b8   :  { %4468 = vsyncadd [#allocation4], 4294967040 }
0x14b9   :  { %3739 = vsyncpa [#allocation3], 1 }
0x14ba   :  { %3740 = vsyncpa [#allocation6], 1 }
0x14bb   :  { %3741 = vsyncpa [#allocation4], 1 }

</bundles_post_ra>
